<compile_context>
chip_gen: v5e
topology: v5e:2x2
jax: 0.10.0
libtpu: 0.0.40
codegen_flags: <defaults>
</compile_context>

<pallas_src>
import functools
import math

import jax
import jax.numpy as jnp
from jax.experimental import pallas as pl
from jax.experimental.pallas import tpu as pltpu


# ----------------------------------------------------------------------------
# helpers
# ----------------------------------------------------------------------------

def _row_tiling(n, max_tile=256):
    """Pick (padded_rows, row_tile): padded_rows % row_tile == 0, tile % 8 == 0."""
    n8 = ((n + 7) // 8) * 8
    if n8 <= max_tile:
        return n8, n8
    return ((n8 + max_tile - 1) // max_tile) * max_tile, max_tile


# ----------------------------------------------------------------------------
# kernel 1: fused input projection for both LSTM directions
#   gates[d] = x @ W_ih[d] + (b_ih[d] + b_hh[d]); W_ih_f|W_ih_b concatenated
#   along the lane-dense 8H output dim so it is one MXU matmul with M = S*Bp.
# ----------------------------------------------------------------------------

def _input_proj_kernel(H, x_ref, w_ref, b_ref, o_ref):
    w = w_ref[...]
    g = jnp.dot(x_ref[...].astype(w.dtype), w,
                preferred_element_type=jnp.float32) + b_ref[...]
    o_ref[0] = g[:, :4 * H]
    o_ref[1] = g[:, 4 * H:]


def input_projection(x_flat, w_cat, b_cat, H, *, max_row_tile=256):
    """x_flat: (N, D); w_cat: (D, 8H); b_cat: (1, 8H)  ->  (2, N, 4H) f32."""
    N, D = x_flat.shape
    Np, tm = _row_tiling(N, max_row_tile)
    if Np != N:
        x_flat = jnp.pad(x_flat, ((0, Np - N), (0, 0)))
    out = pl.pallas_call(
        functools.partial(_input_proj_kernel, H),
        out_shape=jax.ShapeDtypeStruct((2, Np, 4 * H), jnp.float32),
        grid=(Np // tm,),
        in_specs=[
            pl.BlockSpec((tm, D), lambda i: (i, 0)),
            pl.BlockSpec((D, 8 * H), lambda i: (0, 0)),
            pl.BlockSpec((1, 8 * H), lambda i: (0, 0)),
        ],
        out_specs=pl.BlockSpec((2, tm, 4 * H), lambda i: (0, i, 0)),
        compiler_params=pltpu.CompilerParams(
            dimension_semantics=("parallel",)),
    )(x_flat, w_cat, b_cat)
    return out[:, :N, :]


# ----------------------------------------------------------------------------
# kernel 2: the recurrence.  One grid step per direction; inside, a fori_loop
# over time does only  h @ W_hh + gates_in[t]  and the elementwise cell update.
# Direction 1 walks time reversed (tt = S-1-t) so no host-side flips are needed.
# ----------------------------------------------------------------------------

def _lstm_dir_kernel(H, gates_ref, whh_ref, out_ref, h_s, c_s):
    S = gates_ref.shape[0]
    d = pl.program_id(0)                       # 0 = forward, 1 = backward
    h_s[...] = jnp.zeros_like(h_s)
    c_s[...] = jnp.zeros_like(c_s)

    def step(t, carry):
        tt = jnp.where(d == 0, t, S - 1 - t)
        w = whh_ref[...]
        g = gates_ref[tt] + jnp.dot(h_s[...].astype(w.dtype), w,
                                    preferred_element_type=jnp.float32)
        i = jax.nn.sigmoid(g[:, 0 * H:1 * H])
        f = jax.nn.sigmoid(g[:, 1 * H:2 * H])
        gg = jnp.tanh(g[:, 2 * H:3 * H])
        o = jax.nn.sigmoid(g[:, 3 * H:4 * H])
        c_new = f * c_s[...] + i * gg
        h_new = o * jnp.tanh(c_new)
        h_s[...] = h_new
        c_s[...] = c_new
        out_ref[tt] = h_new
        return carry

    jax.lax.fori_loop(0, S, step, 0, unroll=(S <= 16))


def bilstm_recurrence(gates_stacked, whh_stacked, H, *, vmem_limit_bytes=None):
    """gates_stacked: (2, S, Bp, 4H); whh_stacked: (2, H, 4H) -> (2, S, Bp, H)."""
    _, S, Bp, G4 = gates_stacked.shape
    cp_kwargs = dict(dimension_semantics=("parallel",))
    if vmem_limit_bytes is not None:      # raise at production H=1024 on v5e/v6e
        cp_kwargs["vmem_limit_bytes"] = vmem_limit_bytes
    return pl.pallas_call(
        functools.partial(_lstm_dir_kernel, H),
        out_shape=jax.ShapeDtypeStruct((2, S, Bp, H), jnp.float32),
        grid=(2,),
        in_specs=[
            pl.BlockSpec((None, S, Bp, G4), lambda d: (d, 0, 0, 0)),
            pl.BlockSpec((None, H, G4), lambda d: (d, 0, 0)),
        ],
        out_specs=pl.BlockSpec((None, S, Bp, H), lambda d: (d, 0, 0, 0)),
        scratch_shapes=[pltpu.VMEM((Bp, H), jnp.float32),
                        pltpu.VMEM((Bp, H), jnp.float32)],
        compiler_params=pltpu.CompilerParams(**cp_kwargs),
    )(gates_stacked, whh_stacked)


# ----------------------------------------------------------------------------
# kernel 3: hidden2tag without the (S,B,2H) concat; two (H, Tpad) dots summed.
# ----------------------------------------------------------------------------

def _hidden2tag_kernel(x_ref, w_ref, b_ref, o_ref):
    wf = w_ref[0]
    wb = w_ref[1]
    acc = jnp.dot(x_ref[0].astype(wf.dtype), wf,
                  preferred_element_type=jnp.float32)
    acc = acc + jnp.dot(x_ref[1].astype(wb.dtype), wb,
                        preferred_element_type=jnp.float32)
    o_ref[...] = acc + b_ref[...]


def hidden2tag(h_pair, w_pair, b_pad, *, max_row_tile=256):
    """h_pair: (2, N, H); w_pair: (2, H, Tp); b_pad: (1, Tp) -> (N, Tp) f32."""
    _, N, Hh = h_pair.shape
    Tp = w_pair.shape[2]
    Np, tm = _row_tiling(N, max_row_tile)
    if Np != N:
        h_pair = jnp.pad(h_pair, ((0, 0), (0, Np - N), (0, 0)))
    out = pl.pallas_call(
        _hidden2tag_kernel,
        out_shape=jax.ShapeDtypeStruct((Np, Tp), jnp.float32),
        grid=(Np // tm,),
        in_specs=[
            pl.BlockSpec((2, tm, Hh), lambda i: (0, i, 0)),
            pl.BlockSpec((2, Hh, Tp), lambda i: (0, 0, 0)),
            pl.BlockSpec((1, Tp), lambda i: (0, 0)),
        ],
        out_specs=pl.BlockSpec((tm, Tp), lambda i: (i, 0)),
        compiler_params=pltpu.CompilerParams(
            dimension_semantics=("parallel",)),
    )(h_pair, w_pair, b_pad)
    return out[:N]


# ----------------------------------------------------------------------------
# Parameter init (deterministic, synthetic).  Kernel-ready fused / padded
# forms are built ONCE here (not per forward call).
# ----------------------------------------------------------------------------

def init_params(key, vocab_size, lexicon_size, embed_dim, lstm_hidden, tagset,
                kernel_dtype=jnp.float32):
    D = embed_dim * 5
    H = lstm_hidden
    ks = jax.random.split(key, 12)
    s = 1.0 / math.sqrt(H)

    def u(k, shape, scale):
        return jax.random.uniform(k, shape, jnp.float32, -scale, scale)

    params = dict(
        word_emb=jax.random.normal(ks[0], (vocab_size, embed_dim), jnp.float32),
        lex_emb=jax.random.normal(ks[1], (lexicon_size, embed_dim), jnp.float32),
        # LSTM weights stored transposed relative to PyTorch: (in, 4H)
        wih_f=u(ks[2], (D, 4 * H), s),
        whh_f=u(ks[3], (H, 4 * H), s),
        b_f=u(ks[4], (4 * H,), s) + u(ks[5], (4 * H,), s),   # b_ih + b_hh
        wih_b=u(ks[6], (D, 4 * H), s),
        whh_b=u(ks[7], (H, 4 * H), s),
        b_b=u(ks[8], (4 * H,), s) + u(ks[9], (4 * H,), s),
        w_h2t=u(ks[10], (2 * H, tagset), 1.0 / math.sqrt(2 * H)),
        b_h2t=u(ks[11], (tagset,), 1.0 / math.sqrt(2 * H)),
    )

    # Kernel-ready forms. For production H=1024 use kernel_dtype=jnp.bfloat16.
    T = tagset
    Tp = max(128, pl.cdiv(T, 128) * 128)
    params['k_wih'] = jnp.concatenate(
        [params['wih_f'], params['wih_b']], axis=1).astype(kernel_dtype)      # (D, 8H)
    params['k_bih'] = jnp.concatenate(
        [params['b_f'], params['b_b']]).reshape(1, 8 * H).astype(jnp.float32)
    params['k_whh'] = jnp.stack(
        [params['whh_f'], params['whh_b']]).astype(kernel_dtype)              # (2, H, 4H)
    w2 = params['w_h2t']
    wf = jnp.zeros((H, Tp), kernel_dtype).at[:, :T].set(w2[:H].astype(kernel_dtype))
    wb = jnp.zeros((H, Tp), kernel_dtype).at[:, :T].set(w2[H:].astype(kernel_dtype))
    params['k_w_h2t'] = jnp.stack([wf, wb])                                   # (2, H, Tp)
    params['k_b_h2t'] = jnp.zeros((1, Tp), jnp.float32).at[0, :T].set(params['b_h2t'])
    params['tagset'] = T
    return params


# ----------------------------------------------------------------------------
# Forward
# ----------------------------------------------------------------------------

def _pool_indices(idx, lex_emb):
    """Masked-mean pooling of lexicon embeddings (mask = idx>0, slot 0 forced
    True), matching the PyTorch code.  Plain jnp: the work is tiny and
    gather-dominated; a Pallas launch would cost more than the compute."""
    mask = (idx > 0).at[:, :, 0].set(True).astype(jnp.float32)[..., None]
    emb = jnp.take(lex_emb, idx, axis=0)
    return jnp.sum(emb * mask, axis=-2) / jnp.sum(mask, axis=-2)


def bilstm_softmax_forward(params, input_data, batch_B, batch_M, batch_E,
                           batch_S, B_type, M_type, E_type, S_type,
                           model_type='Bi-LSTM', lstm_hidden=128):
    # batch_B / batch_M / batch_E / batch_S are accepted for interface parity
    # but (as in the reference forward) their pooled values never reach the
    # concat that feeds the LSTM, so they do not affect the output.
    assert model_type == 'Bi-LSTM'
    H = lstm_hidden
    word_emb, lex_emb = params['word_emb'], params['lex_emb']
    Bsz, S = input_data.shape

    embeds = jnp.take(word_emb, input_data, axis=0)            # (B,S,E)
    b_t = _pool_indices(B_type, lex_emb)
    m_t = _pool_indices(M_type, lex_emb)
    e_t = _pool_indices(E_type, lex_emb)
    s_t = jnp.take(lex_emb, S_type, axis=0)[:, :, 0, :]        # squeeze(-2)
    feats = jnp.concatenate([embeds, b_t, m_t, e_t, s_t], axis=-1)  # (B,S,5E)
    D = feats.shape[-1]

    # Pad batch to a full sublane (8 rows): avoids partial-sublane stores in
    # the recurrence and improves MXU occupancy of h @ W_hh.
    Bp = ((Bsz + 7) // 8) * 8
    if Bp != Bsz:
        feats = jnp.pad(feats, ((0, Bp - Bsz), (0, 0), (0, 0)))

    x_flat = jnp.transpose(feats, (1, 0, 2)).reshape(S * Bp, D)  # time-major rows

    # 1) hoisted input projection: one big MXU matmul for both directions
    gates = input_projection(x_flat, params['k_wih'], params['k_bih'], H)
    gates = gates.reshape(2, S, Bp, 4 * H)

    # 2) fused recurrence (single invocation, fori_loop over time; the two
    #    directions are independent "parallel" grid steps -> 2 TCs on v7x)
    out = bilstm_recurrence(gates, params['k_whh'], H)           # (2, S, Bp, H)

    # 3) hidden2tag without materializing the (S,B,2H) concat
    logits_flat = hidden2tag(out.reshape(2, S * Bp, H),
                             params['k_w_h2t'], params['k_b_h2t'])
    T = params['tagset']
    logits = logits_flat.reshape(S, Bp, -1).transpose(1, 0, 2)[:Bsz, :, :T]
    # dropout(0.2) is identity at inference; the 'Bi-LSTM' path returns raw logits
    return (logits,)


# ----------------------------------------------------------------------------
# Pure-JAX reference (for correctness check)
# ----------------------------------------------------------------------------

def _ref_lstm_scan(x_sbd, wih, whh, b, H):
    S, Bsz, D = x_sbd.shape

    def step(carry, x):
        h, c = carry
        g = x @ wih + h @ whh + b
        i = jax.nn.sigmoid(g[:, :H])
        f = jax.nn.sigmoid(g[:, H:2 * H])
        gg = jnp.tanh(g[:, 2 * H:3 * H])
        o = jax.nn.sigmoid(g[:, 3 * H:])
        c = f * c + i * gg
        h = o * jnp.tanh(c)
        return (h, c), h

    init = (jnp.zeros((Bsz, H), jnp.float32), jnp.zeros((Bsz, H), jnp.float32))
    _, hs = jax.lax.scan(step, init, x_sbd)
    return hs


def reference_forward(params, input_data, B_type, M_type, E_type, S_type,
                      lstm_hidden=128):
    H = lstm_hidden
    lex = params['lex_emb']

    def pool(idx):
        mask = (idx > 0).at[:, :, 0].set(True).astype(jnp.float32)[..., None]
        emb = lex[idx]
        return jnp.sum(emb * mask, axis=-2) / jnp.sum(mask, axis=-2)

    embeds = params['word_emb'][input_data]
    feats = jnp.concatenate(
        [embeds, pool(B_type), pool(M_type), pool(E_type), lex[S_type][:, :, 0, :]],
        axis=-1)
    x_sbd = jnp.transpose(feats, (1, 0, 2))
    hf = _ref_lstm_scan(x_sbd, params['wih_f'], params['whh_f'], params['b_f'], H)
    hb = _ref_lstm_scan(x_sbd[::-1], params['wih_b'], params['whh_b'],
                        params['b_b'], H)[::-1]
    out = jnp.concatenate([hf, hb], axis=-1)
    out = jnp.transpose(out, (1, 0, 2))
    return out @ params['w_h2t'] + params['b_h2t']


# ----------------------------------------------------------------------------
# Main
# ----------------------------------------------------------------------------

if __name__ == "__main__":
    VOCAB = 100
    LEXICON = 50          # stands in for load_vocab() lexicon size
    EMBED = 32            # embedding_dim
    LSTM_H = 128          # module hardcodes 1024; scaled down, same semantics
    TAGSET = 6
    B, S, K = 2, 8, 4     # batch, seq len, lexicon candidates per token

    key = jax.random.PRNGKey(0)
    k_par, k_in, k_B, k_M, k_E, k_S, kb1, kb2, kb3, kb4 = jax.random.split(key, 10)

    # kernel_dtype=jnp.float32 here so the small-shape check is tight; use
    # jnp.bfloat16 at production H=1024 (halves weight VMEM / HBM traffic).
    params = init_params(k_par, VOCAB, LEXICON, EMBED, LSTM_H, TAGSET,
                         kernel_dtype=jnp.float32)

    input_data = jax.random.randint(k_in, (B, S), 1, VOCAB, jnp.int32)
    B_type = jax.random.randint(k_B, (B, S, K), 0, LEXICON, jnp.int32)
    M_type = jax.random.randint(k_M, (B, S, K), 0, LEXICON, jnp.int32)
    E_type = jax.random.randint(k_E, (B, S, K), 0, LEXICON, jnp.int32)
    S_type = jax.random.randint(k_S, (B, S, 1), 1, LEXICON, jnp.int32)
    # dead inputs (unused in the reference forward's output path)
    batch_B = jax.random.randint(kb1, (B, S, K), 0, LEXICON, jnp.int32)
    batch_M = jax.random.randint(kb2, (B, S, K), 0, LEXICON, jnp.int32)
    batch_E = jax.random.randint(kb3, (B, S, K), 0, LEXICON, jnp.int32)
    batch_S = jax.random.randint(kb4, (B, S, 1), 1, LEXICON, jnp.int32)

    (logits,) = bilstm_softmax_forward(
        params, input_data, batch_B, batch_M, batch_E, batch_S,
        B_type, M_type, E_type, S_type, model_type='Bi-LSTM',
        lstm_hidden=LSTM_H)
    logits = jax.block_until_ready(logits)

    ref = reference_forward(params, input_data, B_type, M_type, E_type, S_type,
                            lstm_hidden=LSTM_H)
    ref = jax.block_until_ready(ref)

    assert logits.shape == (B, S, TAGSET), logits.shape
    max_err = float(jnp.max(jnp.abs(logits - ref)))
    assert max_err < 5e-2, f"mismatch vs reference: max_err={max_err}"

    print("KERNEL_OK")
</pallas_src>

<mosaic_0001>
module attributes {stable_mosaic.version = 11 : i64} {
  func.func @_input_proj_kernel(%arg0: i32, %arg1: memref<64x160xf32, #tpu.memory_space<vmem>>, %arg2: memref<160x1024xf32, #tpu.memory_space<vmem>>, %arg3: memref<1x1024xf32, #tpu.memory_space<vmem>>, %arg4: memref<2x64x512xf32, #tpu.memory_space<vmem>>) attributes {dimension_semantics = [#tpu.dimension_semantics<parallel>], iteration_bounds = array<i64: 1>, scalar_prefetch = 0 : i64, scratch_operands = 0 : i64, tpu.core_type = #tpu.core_type<tc>, window_params = [{transform_indices = @transform_0, window_bounds = array<i64: 64, 160>}, {pipeline_mode = #tpu.pipeline_mode<synchronous>, transform_indices = @transform_1, window_bounds = array<i64: 160, 1024>}, {pipeline_mode = #tpu.pipeline_mode<synchronous>, transform_indices = @transform_2, window_bounds = array<i64: 1, 1024>}, {transform_indices = @transform_3, window_bounds = array<i64: 2, 64, 512>}]} {
    %c0 = arith.constant 0 : index
    %c0_0 = arith.constant 0 : index
    %0 = vector.load %arg2[%c0, %c0_0] : memref<160x1024xf32, #tpu.memory_space<vmem>>, vector<160x1024xf32>
    %c0_1 = arith.constant 0 : index
    %c0_2 = arith.constant 0 : index
    %1 = vector.load %arg1[%c0_1, %c0_2] : memref<64x160xf32, #tpu.memory_space<vmem>>, vector<64x160xf32>
    %cst = arith.constant dense<0.000000e+00> : vector<64x1024xf32>
    %2 = tpu.matmul %1, %0, %cst {dimension_numbers = #tpu.dot_dimension_numbers<[1], [0], [0], [1], [0, 0, 1, 1], [], []>} : vector<64x160xf32>, vector<160x1024xf32>, vector<64x1024xf32> -> vector<64x1024xf32>
    %c0_3 = arith.constant 0 : index
    %c0_4 = arith.constant 0 : index
    %3 = vector.load %arg3[%c0_3, %c0_4] : memref<1x1024xf32, #tpu.memory_space<vmem>>, vector<1x1024xf32>
    %4 = vector.broadcast %3 : vector<1x1024xf32> to vector<64x1024xf32>
    %5 = arith.addf %2, %4 : vector<64x1024xf32>
    %6 = vector.extract_strided_slice %5 {offsets = [0, 0], sizes = [64, 512], strides = [1, 1]} : vector<64x1024xf32> to vector<64x512xf32>
    %c0_5 = arith.constant 0 : index
    %c0_6 = arith.constant 0 : index
    %c0_7 = arith.constant 0 : index
    %7 = vector.load %arg4[%c0_5, %c0_6, %c0_7] : memref<2x64x512xf32, #tpu.memory_space<vmem>>, vector<1x64x512xf32>
    %8 = vector.shape_cast %7 : vector<1x64x512xf32> to vector<64x512xf32>
    %9 = vector.shape_cast %6 : vector<64x512xf32> to vector<1x64x512xf32>
    tpu.vector_store %arg4[%c0_5, %c0_6, %c0_7], %9 {strides = array<i32>} : memref<2x64x512xf32, #tpu.memory_space<vmem>>, vector<1x64x512xf32>,
    %10 = vector.extract_strided_slice %5 {offsets = [0, 512], sizes = [64, 512], strides = [1, 1]} : vector<64x1024xf32> to vector<64x512xf32>
    %c1 = arith.constant 1 : index
    %c0_8 = arith.constant 0 : index
    %c0_9 = arith.constant 0 : index
    %11 = vector.load %arg4[%c1, %c0_8, %c0_9] : memref<2x64x512xf32, #tpu.memory_space<vmem>>, vector<1x64x512xf32>
    %12 = vector.shape_cast %11 : vector<1x64x512xf32> to vector<64x512xf32>
    %13 = vector.shape_cast %10 : vector<64x512xf32> to vector<1x64x512xf32>
    tpu.vector_store %arg4[%c1, %c0_8, %c0_9], %13 {strides = array<i32>} : memref<2x64x512xf32, #tpu.memory_space<vmem>>, vector<1x64x512xf32>,
    return
  }
  func.func @transform_0(%arg0: i32) -> (i32, i32) {
    %c0_i32 = arith.constant 0 : i32
    %c0_i32_0 = arith.constant 0 : i32
    return %arg0, %c0_i32 : i32, i32
  }
  func.func @transform_1(%arg0: i32) -> (i32, i32) {
    %c0_i32 = arith.constant 0 : i32
    %c0_i32_0 = arith.constant 0 : i32
    %c0_i32_1 = arith.constant 0 : i32
    return %c0_i32, %c0_i32_0 : i32, i32
  }
  func.func @transform_2(%arg0: i32) -> (i32, i32) {
    %c0_i32 = arith.constant 0 : i32
    %c0_i32_0 = arith.constant 0 : i32
    %c0_i32_1 = arith.constant 0 : i32
    return %c0_i32, %c0_i32_0 : i32, i32
  }
  func.func @transform_3(%arg0: i32) -> (i32, i32, i32) {
    %c0_i32 = arith.constant 0 : i32
    %c0_i32_0 = arith.constant 0 : i32
    %c0_i32_1 = arith.constant 0 : i32
    return %c0_i32, %arg0, %c0_i32_0 : i32, i32, i32
  }
}

</mosaic_0001>

<bundles_post_ra>
// kernel: tpu_custom_call.1
= control target key start
LH: loop header
LB: loop body
LE: loop exit
PB: predicated region body
PF: predicated region fallthrough
CT: control target
= control target key end

     0   :  { %8 = vsyncpa [#allocation3], 0  ;;  %s1644_s0 = inlined_call_operand.hbm [shape: f32[64,160], index: 0, kind: input, shape index: {}]   ;;  %s1645_s1 = inlined_call_operand.hbm [shape: f32[160,1024], index: 1, kind: input, shape index: {}]   ;;  %s1646_s2 = inlined_call_operand.hbm [shape: f32[1,1024], index: 2, kind: input, shape index: {}]   ;;  %s1647_s3 = inlined_call_operand.hbm [shape: f32[2,64,512], index: 3, kind: output, shape index: {}]  }
   0x1   :  { %9 = vsyncpa [#allocation6], 0  ;;  %s28_s14 = sshll.u32 %s1645_s1, 4  ;;  %s29_s14 = int_to_ptr.hbm [resolvable:$true] %s28_s14 }
   0x2   :  { %10 = vsyncpa [#allocation4], 0  ;;  %s1217_s15 = smov [#allocation5]   ;;  %s15_s19 = sshll.u32 %s1644_s0, 4  ;;  %s16_s19 = int_to_ptr.hbm [resolvable:$true] %s15_s19 }
   0x3   :  { %s30_s16 = sshll.u32 %s1217_s15, 4  ;;  %s1218_s20 = smov 1024   ;;  %s31_s16 = int_to_ptr.vmem [resolvable:$true] %s30_s16 }
   0x4   :  { %s1219_s21 = smov 64   ;;  %s1220_s22 = smov [#allocation2]  }
   0x5   :  { %36 = dma.hbm_to_vmem [thread:$0]  %s29_s14, 20480, %s31_s16, [#allocation6], %s1218_s20, %s1218_s20, %s1219_s21  }
   0x6   :  { %s17_s23 = sshll.u32 %s1220_s22, 4  ;;  %s1221_s24 = smov 256   ;;  %s18_s23 = int_to_ptr.vmem [resolvable:$true] %s17_s23 }
   0x7   :  { %s1222_s25 = smov 16   ;;  %s42_s27 = sshll.u32 %s1646_s2, 4  ;;  %s43_s27 = int_to_ptr.hbm [resolvable:$true] %s42_s27 }
   0x8   :  { %23 = dma.hbm_to_vmem [thread:$0]  %s16_s19, 2048, %s18_s23, [#allocation3], %s1221_s24, %s1221_s24, %s1222_s25  }
   0x9   :  { %s1223_s28 = smov [#allocation7]  }
   0xa   :  { %s44_s29 = sshll.u32 %s1223_s28, 4  ;;  %s45_s29 = int_to_ptr.vmem [resolvable:$true] %s44_s29 }
   0xb   :  { %47 = dma.hbm_to_vmem [thread:$0]  %s43_s27, 128, %s45_s29, [#allocation6]  }
   0xc   :  { %1211 = dma.done.wait [#allocation3], 2048  }
   0xd   :  { %1212 = vsyncadd [#allocation3], 4294965248 }
   0xe   :  { %1213 = dma.done.wait [#allocation6], 20608  }
   0xf   :  { %1214 = vsyncadd [#allocation6], 4294946688  ;;  %v180_v0 = vld [vmem:[#allocation5 + $0x3c0] sm:$0xff]  ;;  %v181_v1 = vld [vmem:[#allocation5 + $0x3c8] sm:$0xff]  ;;  %vm254_vm0 = vcmask 261120   ;;  %s1224_s0 = smov [#allocation8]  }
  0x10   :  { %v213_v2 = vld [vmem:[#allocation5 + $0x4c8] sm:$0xff]  ;;  %279 = vmatpush.msra.mxu0 %v180_v0  ;;  %361 = vmatpush.msra.mxu2 %v181_v1  ;;  %v172_v3 = vld [vmem:[#allocation5 + $0x380] sm:$0xff]  ;;  %v214_v18 = vld [vmem:[#allocation5 + $0x4d0] sm:$0xff]  ;;  %s1004_s2 = sshll.u32 %s1224_s0, 4  ;;  %s1006_s5 = sshll.u32 %s1647_s3, 4  ;;  %s1005_s2 = int_to_ptr.vmem [resolvable:$true] %s1004_s2  ;;  %s1007_s5 = int_to_ptr.hbm [resolvable:$true] %s1006_s5 }
  0x11   :  { %v173_v4 = vld [vmem:[#allocation5 + $0x388] sm:$0xff]  ;;  %414 = vmatpush.msra.mxu3 %v213_v2  ;;  %v164_v6 = vld [vmem:[#allocation5 + $0x340] sm:$0xff]  ;;  %v182_v26 = vld [vmem:[#allocation5 + $0x3d0] sm:$0xff]  ;;  %s1225_s6 = smov 512   ;;  %s1226_s7 = smov 32  }
  0x12   :  { %v205_v5 = vld [vmem:[#allocation5 + $0x488] sm:$0xff]  ;;  %280 = vmatpush.msra.mxu0 %v172_v3  ;;  %362 = vmatpush.msra.mxu2 %v173_v4  ;;  %v156_v9 = vld [vmem:[#allocation5 + $0x300] sm:$0xff]  ;;  %v1260_v27 = vld [vmem:[#allocation2 + $0x18] sm:$0xff] }
  0x13   :  { %v165_v7 = vld [vmem:[#allocation5 + $0x348] sm:$0xff]  ;;  %415 = vmatpush.msra.mxu3 %v205_v5  ;;  %v148_v13 = vld [vmem:[#allocation5 + $0x2c0] sm:$0xff]  ;;  %v174_v30 = vld [vmem:[#allocation5 + $0x390] sm:$0xff] }
  0x14   :  { %v197_v8 = vld [vmem:[#allocation5 + $0x448] sm:$0xff]  ;;  %281 = vmatpush.msra.mxu0 %v164_v6  ;;  %363 = vmatpush.msra.mxu2 %v165_v7  ;;  %v212_v14 = vld [vmem:[#allocation5 + $0x4c0] sm:$0xff]  ;;  %v206_v32 = vld [vmem:[#allocation5 + $0x490] sm:$0xff] }
  0x15   :  { %v157_v10 = vld [vmem:[#allocation5 + $0x308] sm:$0xff]  ;;  %416 = vmatpush.msra.mxu3 %v197_v8  ;;  %v204_v16 = vld [vmem:[#allocation5 + $0x480] sm:$0xff]  ;;  %332 = vmatpush.msra.mxu1 %v212_v14  ;;  %v166_v34 = vld [vmem:[#allocation5 + $0x350] sm:$0xff] }
  0x16   :  { %v189_v11 = vld [vmem:[#allocation5 + $0x408] sm:$0xff]  ;;  %282 = vmatpush.msra.mxu0 %v156_v9  ;;  %364 = vmatpush.msra.mxu2 %v157_v10  ;;  %v140_v17 = vld [vmem:[#allocation5 + $0x280] sm:$0xff]  ;;  %v158_v37 = vld [vmem:[#allocation5 + $0x310] sm:$0xff] }
  0x17   :  { %v1256_v12 = vld [vmem:[#allocation2 + $0x8] sm:$0xff]  ;;  %417 = vmatpush.msra.mxu3 %v189_v11  ;;  %v196_v20 = vld [vmem:[#allocation5 + $0x440] sm:$0xff]  ;;  %333 = vmatpush.msra.mxu1 %v204_v16  ;;  %v150_v40 = vld [vmem:[#allocation5 + $0x2d0] sm:$0xff] }
  0x18   :  { %v149_v15 = vld [vmem:[#allocation5 + $0x2c8] sm:$0xff]  ;;  %1028 = vmatmul.msk.f32.vlgmr.msra.gmra.mxu3 %vm254_vm0, %v1256_v12  ;;  %283 = vmatpush.msra.mxu0 %v148_v13  ;;  %v132_v21 = vld [vmem:[#allocation5 + $0x240] sm:$0xff]  ;;  %v142_v44 = vld [vmem:[#allocation5 + $0x290] sm:$0xff] }
  0x19   :  { %v141_v19 = vld [vmem:[#allocation5 + $0x288] sm:$0xff]  ;;  %365 = vmatpush.msra.mxu2 %v149_v15  ;;  %496 = vmatpush.msrb.mxu3 %v214_v18  ;;  %v188_v23 = vld [vmem:[#allocation5 + $0x400] sm:$0xff]  ;;  %v198_v46 = vld [vmem:[#allocation5 + $0x450] sm:$0xff] }
  0x1a   :  { %284 = vmatpush.msra.mxu0 %v140_v17  ;;  %v133_v22 = vld [vmem:[#allocation5 + $0x248] sm:$0xff]  ;;  %v124_v24 = vld [vmem:[#allocation5 + $0x200] sm:$0xff]  ;;  %334 = vmatpush.msra.mxu1 %v196_v20  ;;  %v134_v48 = vld [vmem:[#allocation5 + $0x250] sm:$0xff] }
  0x1b   :  { %366 = vmatpush.msra.mxu2 %v141_v19  ;;  %v125_v25 = vld [vmem:[#allocation5 + $0x208] sm:$0xff]  ;;  %v116_v28 = vld [vmem:[#allocation5 + $0x1c0] sm:$0xff]  ;;  %497 = vmatpush.msrb.mxu3 %v206_v32  ;;  %v126_v51 = vld [vmem:[#allocation5 + $0x210] sm:$0xff] }
  0x1c   :  { %285 = vmatpush.msra.mxu0 %v132_v21  ;;  %335 = vmatpush.msra.mxu1 %v188_v23  ;;  %v117_v29 = vld [vmem:[#allocation5 + $0x1c8] sm:$0xff]  ;;  %v108_v31 = vld [vmem:[#allocation5 + $0x180] sm:$0xff]  ;;  %v1274_v55 = vld [vmem:[#allocation2 + $0x38] sm:$0xff] }
  0x1d   :  { %367 = vmatpush.msra.mxu2 %v133_v22  ;;  %1020 = vmatmul.msk.f32.vlgmr.msra.gmra.mxu1 %vm254_vm0, %v1256_v12  ;;  %v109_v33 = vld [vmem:[#allocation5 + $0x188] sm:$0xff]  ;;  %v100_v35 = vld [vmem:[#allocation5 + $0x140] sm:$0xff]  ;;  %v215_v56 = vld [vmem:[#allocation5 + $0x4d8] sm:$0xff] }
  0x1e   :  { %286 = vmatpush.msra.mxu0 %v124_v24  ;;  %443 = vmatpush.msrb.mxu1 %v182_v26  ;;  %v101_v36 = vld [vmem:[#allocation5 + $0x148] sm:$0xff]  ;;  %v92_v38 = vld [vmem:[#allocation5 + $0x100] sm:$0xff]  ;;  %v183_v57 = vld [vmem:[#allocation5 + $0x3d8] sm:$0xff] }
  0x1f   :  { %368 = vmatpush.msra.mxu2 %v125_v25  ;;  %v93_v39 = vld [vmem:[#allocation5 + $0x108] sm:$0xff]  ;;  %v84_v42 = vld [vmem:[#allocation5 + $0xc0] sm:$0xff]  ;;  %498 = vmatpush.msrb.mxu3 %v198_v46  ;;  %v118_v58 = vld [vmem:[#allocation5 + $0x1d0] sm:$0xff] }
  0x20   :  { %1029 = vmatmul.msk.f32.gmra.mxu3 %vm254_vm0, %v1260_v27  ;;  %287 = vmatpush.msra.mxu0 %v116_v28  ;;  %v1266_v41 = vld [vmem:[#allocation2 + $0x28] sm:$0xff]  ;;  %v76_v45 = vld [vmem:[#allocation5 + $0x80] sm:$0xff]  ;;  %v175_v59 = vld [vmem:[#allocation5 + $0x398] sm:$0xff] }
  0x21   :  { %369 = vmatpush.msra.mxu2 %v117_v29  ;;  %444 = vmatpush.msrb.mxu1 %v174_v30  ;;  %v85_v43 = vld [vmem:[#allocation5 + $0xc8] sm:$0xff]  ;;  %v68_v49 = vld [vmem:[#allocation5 + $0x40] sm:$0xff]  ;;  %v207_v60 = vld [vmem:[#allocation5 + $0x498] sm:$0xff] }
  0x22   :  { %288 = vmatpush.msra.mxu0 %v108_v31  ;;  %v77_v47 = vld [vmem:[#allocation5 + $0x88] sm:$0xff]  ;;  %v60_v52 = vld [vmem:[#allocation5] sm:$0xff]  ;;  %v190_v61 = vld [vmem:[#allocation5 + $0x410] sm:$0xff] }
  0x23   :  { %370 = vmatpush.msra.mxu2 %v109_v33  ;;  %445 = vmatpush.msrb.mxu1 %v166_v34  ;;  %v69_v50 = vld [vmem:[#allocation5 + $0x48] sm:$0xff]  ;;  %v1272_v54 = vld [vmem:[#allocation2] sm:$0xff]  ;;  %v110_v62 = vld [vmem:[#allocation5 + $0x190] sm:$0xff] }
  0x24   :  { %289 = vmatpush.msra.mxu0 %v100_v35  ;;  %v61_v53 = vld [vmem:[#allocation5 + $0x8] sm:$0xff]  ;;  %v167_v63 = vld [vmem:[#allocation5 + $0x358] sm:$0xff]  ;;  %499 = vmatpush.msrb.mxu3 %v190_v61  ;;  %v1282_v1 = vld [vmem:[#allocation2 + $0x10] sm:$0xff] }
  0x25   :  { %371 = vmatpush.msra.mxu2 %v101_v36  ;;  %446 = vmatpush.msrb.mxu1 %v158_v37  ;;  %v199_v0 = vld [vmem:[#allocation5 + $0x458] sm:$0xff]  ;;  %v102_v2 = vld [vmem:[#allocation5 + $0x150] sm:$0xff]  ;;  %v1284_v3 = vld [vmem:[#allocation2 + $0x48] sm:$0xff] }
  0x26   :  { %290 = vmatpush.msra.mxu0 %v92_v38  ;;  %1021 = vmatmul.msk.f32.gmra.mxu1 %vm254_vm0, %v1260_v27  ;;  %v159_v4 = vld [vmem:[#allocation5 + $0x318] sm:$0xff]  ;;  %v94_v5 = vld [vmem:[#allocation5 + $0x110] sm:$0xff]  ;;  %v1292_v10 = vld [vmem:[#allocation2 + $0x20] sm:$0xff] }
  0x27   :  { %372 = vmatpush.msra.mxu2 %v93_v39  ;;  %447 = vmatpush.msrb.mxu1 %v150_v40  ;;  %v151_v6 = vld [vmem:[#allocation5 + $0x2d8] sm:$0xff]  ;;  %v86_v7 = vld [vmem:[#allocation5 + $0xd0] sm:$0xff]  ;;  %v184_v18 = vld [vmem:[#allocation5 + $0x3e0] sm:$0xff] }
  0x28   :  { %1030 = vmatmul.msk.f32.gmra.mxu3 %vm254_vm0, %v1266_v41  ;;  %291 = vmatpush.msra.mxu0 %v84_v42  ;;  %v143_v8 = vld [vmem:[#allocation5 + $0x298] sm:$0xff]  ;;  %v78_v9 = vld [vmem:[#allocation5 + $0x90] sm:$0xff]  ;;  %v1304_v21 = vld [vmem:[#allocation2 + $0x68] sm:$0xff] }
  0x29   :  { %373 = vmatpush.msra.mxu2 %v85_v43  ;;  %448 = vmatpush.msrb.mxu1 %v142_v44  ;;  %v70_v11 = vld [vmem:[#allocation5 + $0x50] sm:$0xff]  ;;  %v1294_v13 = vld [vmem:[#allocation2 + $0x58] sm:$0xff]  ;;  %v176_v24 = vld [vmem:[#allocation5 + $0x3a0] sm:$0xff] }
  0x2a   :  { %292 = vmatpush.msra.mxu0 %v76_v45  ;;  %1084 = vmatpush.msra.mxu3 %v215_v56  ;;  %v135_v14 = vld [vmem:[#allocation5 + $0x258] sm:$0xff]  ;;  %v62_v16 = vld [vmem:[#allocation5 + $0x10] sm:$0xff]  ;;  %v168_v25 = vld [vmem:[#allocation5 + $0x360] sm:$0xff] }
  0x2b   :  { %374 = vmatpush.msra.mxu2 %v77_v47  ;;  %449 = vmatpush.msrb.mxu1 %v134_v48  ;;  %v127_v15 = vld [vmem:[#allocation5 + $0x218] sm:$0xff]  ;;  %v1302_v20 = vld [vmem:[#allocation2 + $0x30] sm:$0xff]  ;;  %v1312_v28 = vld [vmem:[#allocation2 + $0x40] sm:$0xff] }
  0x2c   :  { %293 = vmatpush.msra.mxu0 %v68_v49  ;;  %1085 = vmatpush.msra.mxu3 %v207_v60  ;;  %v191_v17 = vld [vmem:[#allocation5 + $0x418] sm:$0xff]  ;;  %v160_v32 = vld [vmem:[#allocation5 + $0x320] sm:$0xff]  ;;  %v217_v33 = vld [vmem:[#allocation5 + $0x4e8] sm:$0xff] }
  0x2d   :  { %375 = vmatpush.msra.mxu2 %v69_v50  ;;  %450 = vmatpush.msrb.mxu1 %v126_v51  ;;  %v119_v19 = vld [vmem:[#allocation5 + $0x1d8] sm:$0xff]  ;;  %v152_v34 = vld [vmem:[#allocation5 + $0x2e0] sm:$0xff]  ;;  %v1322_v36 = vld [vmem:[#allocation2 + $0x50] sm:$0xff] }
  0x2e   :  { %294 = vmatpush.msra.mxu0 %v60_v52  ;;  %1022 = vmatmul.msk.f32.gmra.mxu1 %vm254_vm0, %v1266_v41  ;;  %v111_v22 = vld [vmem:[#allocation5 + $0x198] sm:$0xff]  ;;  %v185_v38 = vld [vmem:[#allocation5 + $0x3e8] sm:$0xff]  ;;  %v144_v39 = vld [vmem:[#allocation5 + $0x2a0] sm:$0xff] }
  0x2f   :  { %376 = vmatpush.msra.mxu2 %v61_v53  ;;  %295 = vmatmul.f32.vlgmr.msra.gmra.mxu0 %v1272_v54  ;;  %v103_v23 = vld [vmem:[#allocation5 + $0x158] sm:$0xff]  ;;  %v136_v40 = vld [vmem:[#allocation5 + $0x260] sm:$0xff]  ;;  %v177_v42 = vld [vmem:[#allocation5 + $0x3a8] sm:$0xff] }
  0x30   :  { %377 = vmatmul.f32.vlgmr.msra.gmra.mxu2 %v1272_v54  ;;  %1031 = vmatmul.msk.f32.gmra.mxu3 %vm254_vm0, %v1274_v55  ;;  %v95_v26 = vld [vmem:[#allocation5 + $0x118] sm:$0xff]  ;;  %v209_v43 = vld [vmem:[#allocation5 + $0x4a8] sm:$0xff]  ;;  %v1330_v45 = vld [vmem:[#allocation2 + $0x60] sm:$0xff] }
  0x31   :  { %578 = vmatpush.msrb.mxu2 %v215_v56  ;;  %525 = vmatpush.msrb.mxu0 %v183_v57  ;;  %v1314_v29 = vld [vmem:[#allocation2 + $0x78] sm:$0xff]  ;;  %v169_v44 = vld [vmem:[#allocation5 + $0x368] sm:$0xff]  ;;  %v128_v46 = vld [vmem:[#allocation5 + $0x220] sm:$0xff] }
  0x32   :  { %451 = vmatpush.msrb.mxu1 %v118_v58  ;;  %1086 = vmatpush.msra.mxu3 %v199_v0  ;;  %v87_v30 = vld [vmem:[#allocation5 + $0xd8] sm:$0xff]  ;;  %v161_v47 = vld [vmem:[#allocation5 + $0x328] sm:$0xff]  ;;  %v120_v48 = vld [vmem:[#allocation5 + $0x1e0] sm:$0xff] }
  0x33   :  { %526 = vmatpush.msrb.mxu0 %v175_v59  ;;  %579 = vmatpush.msrb.mxu2 %v207_v60  ;;  %v79_v31 = vld [vmem:[#allocation5 + $0x98] sm:$0xff]  ;;  %v153_v49 = vld [vmem:[#allocation5 + $0x2e8] sm:$0xff]  ;;  %v1337_v50 = vld [vmem:[#allocation2 + $0x70] sm:$0xff] }
  0x34   :  { %452 = vmatpush.msrb.mxu1 %v110_v62  ;;  %1087 = vmatpush.msra.mxu3 %v191_v17  ;;  %v71_v35 = vld [vmem:[#allocation5 + $0x58] sm:$0xff]  ;;  %v112_v51 = vld [vmem:[#allocation5 + $0x1a0] sm:$0xff]  ;;  %v145_v52 = vld [vmem:[#allocation5 + $0x2a8] sm:$0xff] }
  0x35   :  { %527 = vmatpush.msrb.mxu0 %v167_v63  ;;  %580 = vmatpush.msrb.mxu2 %v199_v0  ;;  %v63_v37 = vld [vmem:[#allocation5 + $0x18] sm:$0xff]  ;;  %v104_v53 = vld [vmem:[#allocation5 + $0x160] sm:$0xff]  ;;  %v137_v56 = vld [vmem:[#allocation5 + $0x268] sm:$0xff] }
  0x36   :  { %1023 = vmatmul.msk.f32.gmra.mxu1 %vm254_vm0, %v1274_v55  ;;  %v201_v57 = vld [vmem:[#allocation5 + $0x468] sm:$0xff]  ;;  %v96_v58 = vld [vmem:[#allocation5 + $0x120] sm:$0xff] }
  0x37   :  { %298 = vmatmul.f32.gmra.mxu0 %v1282_v1  ;;  %453 = vmatpush.msrb.mxu1 %v102_v2  ;;  %v129_v59 = vld [vmem:[#allocation5 + $0x228] sm:$0xff]  ;;  %v88_v60 = vld [vmem:[#allocation5 + $0xe0] sm:$0xff] }
  0x38   :  { %380 = vmatmul.f32.gmra.mxu2 %v1282_v1  ;;  %1032 = vmatmul.msk.f32.gmra.mxu3 %vm254_vm0, %v1284_v3  ;;  %v121_v61 = vld [vmem:[#allocation5 + $0x1e8] sm:$0xff]  ;;  %v80_v62 = vld [vmem:[#allocation5 + $0xa0] sm:$0xff] }
  0x39   :  { %528 = vmatpush.msrb.mxu0 %v159_v4  ;;  %454 = vmatpush.msrb.mxu1 %v94_v5  ;;  %v113_v63 = vld [vmem:[#allocation5 + $0x1a8] sm:$0xff]  ;;  %v216_v0 = vld [vmem:[#allocation5 + $0x4e0] sm:$0xff] }
  0x3a   :  { %581 = vmatpush.msrb.mxu2 %v191_v17  ;;  %v193_v2 = vld [vmem:[#allocation5 + $0x428] sm:$0xff]  ;;  %v208_v4 = vld [vmem:[#allocation5 + $0x4a0] sm:$0xff]  ;;  %v178_v17 = vld [vmem:[#allocation5 + $0x3b0] sm:$0xff] }
  0x3b   :  { %529 = vmatpush.msrb.mxu0 %v151_v6  ;;  %455 = vmatpush.msrb.mxu1 %v86_v7  ;;  %v72_v5 = vld [vmem:[#allocation5 + $0x60] sm:$0xff]  ;;  %v105_v6 = vld [vmem:[#allocation5 + $0x168] sm:$0xff] }
  0x3c   :  { %742 = vmatpush.msra.mxu2 %v217_v33  ;;  %v200_v7 = vld [vmem:[#allocation5 + $0x460] sm:$0xff]  ;;  %v1382_v33 = vld [vmem:[#allocation5 + $0x3b8] sm:$0xff] }
  0x3d   :  { %530 = vmatpush.msrb.mxu0 %v143_v8  ;;  %456 = vmatpush.msrb.mxu1 %v78_v9  ;;  %v192_v8 = vld [vmem:[#allocation5 + $0x420] sm:$0xff] }
  0x3e   :  { %1024 = vmatmul.msk.f32.gmra.mxu1 %vm254_vm0, %v1284_v3  ;;  %743 = vmatpush.msra.mxu2 %v209_v43  ;;  %v64_v9 = vld [vmem:[#allocation5 + $0x20] sm:$0xff] }
  0x3f   :  { %301 = vmatmul.f32.gmra.mxu0 %v1292_v10  ;;  %457 = vmatpush.msrb.mxu1 %v70_v11  ;;  %v97_v11 = vld [vmem:[#allocation5 + $0x128] sm:$0xff] }
  0x40   :  { %383 = vmatmul.f32.gmra.mxu2 %v1292_v10  ;;  %1033 = vmatmul.msk.f32.gmra.mxu3 %vm254_vm0, %v1294_v13 }
  0x41   :  { %531 = vmatpush.msrb.mxu0 %v135_v14  ;;  %458 = vmatpush.msrb.mxu1 %v62_v16  ;;  %v89_v14 = vld [vmem:[#allocation5 + $0xe8] sm:$0xff] }
  0x42   :  { %744 = vmatpush.msra.mxu2 %v201_v57  ;;  %v81_v16 = vld [vmem:[#allocation5 + $0xa8] sm:$0xff] }
  0x43   :  { %607 = vmatpush.msra.mxu1 %v184_v18  ;;  %532 = vmatpush.msrb.mxu0 %v127_v15  ;;  %v186_v15 = vld [vmem:[#allocation5 + $0x3f0] sm:$0xff]  ;;  %v219_v18 = vld [vmem:[#allocation5 + $0x4f8] sm:$0xff] }
  0x44   :  { %745 = vmatpush.msra.mxu2 %v193_v2  ;;  %v98_v2 = vld [vmem:[#allocation5 + $0x130] sm:$0xff] }
  0x45   :  { %533 = vmatpush.msrb.mxu0 %v119_v19  ;;  %608 = vmatpush.msra.mxu1 %v176_v24  ;;  %v73_v19 = vld [vmem:[#allocation5 + $0x68] sm:$0xff]  ;;  %v162_v24 = vld [vmem:[#allocation5 + $0x330] sm:$0xff] }
  0x46   :  { %1025 = vmatmul.msk.f32.gmra.mxu1 %vm254_vm0, %v1294_v13 }
  0x47   :  { %304 = vmatmul.f32.gmra.mxu0 %v1302_v20  ;;  %609 = vmatpush.msra.mxu1 %v168_v25  ;;  %v218_v25 = vld [vmem:[#allocation5 + $0x4f0] sm:$0xff] }
  0x48   :  { %386 = vmatmul.f32.gmra.mxu2 %v1302_v20  ;;  %1034 = vmatmul.msk.f32.gmra.mxu3 %vm254_vm0, %v1304_v21 }
  0x49   :  { %534 = vmatpush.msrb.mxu0 %v111_v22  ;;  %610 = vmatpush.msra.mxu1 %v160_v32  ;;  %v170_v22 = vld [vmem:[#allocation5 + $0x370] sm:$0xff] }
  0x4a   :  { %v210_v32 = vld [vmem:[#allocation5 + $0x4b0] sm:$0xff] }
  0x4b   :  { %535 = vmatpush.msrb.mxu0 %v103_v23  ;;  %611 = vmatpush.msra.mxu1 %v152_v34  ;;  %v65_v23 = vld [vmem:[#allocation5 + $0x28] sm:$0xff]  ;;  %v211_v34 = vld [vmem:[#allocation5 + $0x4b8] sm:$0xff] }
  0x4d   :  { %536 = vmatpush.msrb.mxu0 %v95_v26  ;;  %612 = vmatpush.msra.mxu1 %v144_v39  ;;  %v154_v26 = vld [vmem:[#allocation5 + $0x2f0] sm:$0xff]  ;;  %v1394_v39 = vld [vmem:[#allocation5 + $0x378] sm:$0xff] }
  0x4e   :  { %1026 = vmatmul.msk.f32.gmra.mxu1 %vm254_vm0, %v1304_v21 }
  0x4f   :  { %307 = vmatmul.f32.gmra.mxu0 %v1312_v28  ;;  %613 = vmatpush.msra.mxu1 %v136_v40  ;;  %v130_v40 = vld [vmem:[#allocation5 + $0x230] sm:$0xff] }
  0x50   :  { %389 = vmatmul.f32.gmra.mxu2 %v1312_v28  ;;  %1035 = vmatmul.msk.f32.gmra.mxu3 %vm254_vm0, %v1314_v29 }
  0x51   :  { %537 = vmatpush.msrb.mxu0 %v87_v30  ;;  %614 = vmatpush.msra.mxu1 %v128_v46  ;;  %v1380_v30 = vld [vmem:[#allocation5 + $0x3f8] sm:$0xff]  ;;  %v1403_v46 = vld [vmem:[#allocation7] sm:$0xff] }
  0x53   :  { %538 = vmatpush.msrb.mxu0 %v79_v31  ;;  %615 = vmatpush.msra.mxu1 %v120_v48  ;;  %v146_v31 = vld [vmem:[#allocation5 + $0x2b0] sm:$0xff]  ;;  %v1410_v48 = vld [vmem:[#allocation5 + $0x2f8] sm:$0xff] }
  0x55   :  { %539 = vmatpush.msrb.mxu0 %v71_v35  ;;  %616 = vmatpush.msra.mxu1 %v112_v51  ;;  %v114_v51 = vld [vmem:[#allocation5 + $0x1b0] sm:$0xff] }
  0x56   :  { %1027 = vmatmul.msk.f32.gmra.mxu1 %vm254_vm0, %v1314_v29 }
  0x57   :  { %310 = vmatmul.f32.gmra.mxu0 %v1322_v36  ;;  %617 = vmatpush.msra.mxu1 %v104_v53  ;;  %v1416_v53 = vld [vmem:[#allocation5 + $0x2b8] sm:$0xff] }
  0x58   :  { %392 = vmatmul.f32.gmra.mxu2 %v1322_v36  ;;  %1036 = vmatmul.msk.f32.vlgmr.msrb.gmra.mxu3 %vm254_vm0, %v1256_v12 }
  0x59   :  { %540 = vmatpush.msrb.mxu0 %v63_v37  ;;  %618 = vmatpush.msra.mxu1 %v96_v58 }
  0x5a   :  { %660 = vmatpush.msrb.mxu3 %v216_v0  ;;  %v1431_v0 = vld [vmem:[#allocation5 + $0x278] sm:$0xff] }
  0x5b   :  { %689 = vmatpush.msra.mxu0 %v185_v38  ;;  %619 = vmatpush.msra.mxu1 %v88_v60  ;;  %v138_v38 = vld [vmem:[#allocation5 + $0x270] sm:$0xff] }
  0x5c   :  { %661 = vmatpush.msrb.mxu3 %v208_v4  ;;  %v1434_v4 = vld [vmem:[#allocation5 + $0x238] sm:$0xff] }
  0x5d   :  { %690 = vmatpush.msra.mxu0 %v177_v42  ;;  %620 = vmatpush.msra.mxu1 %v80_v62  ;;  %v1397_v42 = vld [vmem:[#allocation5 + $0x338] sm:$0xff]  ;;  %v1429_v62 = vperm.slane %v1403_v46, 1 }
  0x5e   :  { %459 = vmatmul.f32.vlgmr.msrb.gmra.mxu1 %v1272_v54  ;;  %662 = vmatpush.msrb.mxu3 %v200_v7 }
  0x5f   :  { %691 = vmatpush.msra.mxu0 %v169_v44  ;;  %621 = vmatpush.msra.mxu1 %v72_v5 }
  0x60   :  { %313 = vmatmul.f32.gmra.mxu0 %v1330_v45  ;;  %395 = vmatmul.f32.gmra.mxu2 %v1330_v45 }
  0x61   :  { %1037 = vmatmul.msk.f32.gmra.mxu3 %vm254_vm0, %v1260_v27  ;;  %692 = vmatpush.msra.mxu0 %v161_v47  ;;  %v122_v47 = vld [vmem:[#allocation5 + $0x1f0] sm:$0xff] }
  0x62   :  { %663 = vmatpush.msrb.mxu3 %v192_v8  ;;  %622 = vmatpush.msra.mxu1 %v64_v9 }
  0x63   :  { %693 = vmatpush.msra.mxu0 %v153_v49  ;;  %v1413_v49 = vperm.slane %v1403_v46, 0 }
  0x64   :  { %771 = vmatpush.msrb.mxu1 %v186_v15 }
  0x65   :  { %694 = vmatpush.msra.mxu0 %v145_v52  ;;  %v202_v52 = vld [vmem:[#allocation5 + $0x470] sm:$0xff] }
  0x66   :  { %462 = vmatmul.f32.gmra.mxu1 %v1282_v1 }
  0x67   :  { %695 = vmatpush.msra.mxu0 %v137_v56  ;;  %772 = vmatpush.msrb.mxu1 %v178_v17  ;;  %v203_v56 = vld [vmem:[#allocation5 + $0x478] sm:$0xff] }
  0x68   :  { %316 = vmatmul.f32.gmra.mxu0 %v1337_v50  ;;  %398 = vmatmul.f32.gmra.mxu2 %v1337_v50  ;;  %v1448_v17 = vld [vmem:[#allocation5 + $0x1f8] sm:$0xff] }
  0x69   :  { %1038 = vmatmul.msk.f32.gmra.mxu3 %vm254_vm0, %v1266_v41  ;;  %696 = vmatpush.msra.mxu0 %v129_v59 }
  0x6a   :  { %773 = vmatpush.msrb.mxu1 %v170_v22  ;;  %v1451_v22 = vld [vmem:[#allocation5 + $0x1b8] sm:$0xff] }
  0x6b   :  { %697 = vmatpush.msra.mxu0 %v121_v61 }
  0x6c   :  { %774 = vmatpush.msrb.mxu1 %v162_v24 }
  0x6d   :  { %698 = vmatpush.msra.mxu0 %v113_v63  ;;  %v106_v63 = vld [vmem:[#allocation5 + $0x170] sm:$0xff] }
  0x6e   :  { %465 = vmatmul.f32.gmra.mxu1 %v1292_v10 }
  0x6f   :  { %699 = vmatpush.msra.mxu0 %v105_v6  ;;  %775 = vmatpush.msrb.mxu1 %v154_v26 }
  0x70   :  { %541 = vmatmul.f32.vlgmr.msrb.gmra.mxu0 %v1272_v54  ;;  %1044 = vmatmul.msk.f32.vlgmr.msrb.gmra.mxu2 %vm254_vm0, %v1256_v12 }
  0x71   :  { %1039 = vmatmul.msk.f32.gmra.mxu3 %vm254_vm0, %v1274_v55  ;;  %700 = vmatpush.msra.mxu0 %v97_v11 }
  0x72   :  { %906 = vmatpush.msrb.mxu2 %v219_v18  ;;  %776 = vmatpush.msrb.mxu1 %v146_v31  ;;  %v82_v18 = vld [vmem:[#allocation5 + $0xb0] sm:$0xff] }
  0x73   :  { %701 = vmatpush.msra.mxu0 %v89_v14 }
  0x74   :  { %907 = vmatpush.msrb.mxu2 %v211_v34  ;;  %777 = vmatpush.msrb.mxu1 %v138_v38  ;;  %v74_v38 = vld [vmem:[#allocation5 + $0x70] sm:$0xff] }
  0x75   :  { %702 = vmatpush.msra.mxu0 %v81_v16  ;;  %v90_v16 = vld [vmem:[#allocation5 + $0xf0] sm:$0xff] }
  0x76   :  { %468 = vmatmul.f32.gmra.mxu1 %v1302_v20  ;;  %908 = vmatpush.msrb.mxu2 %v203_v56 }
  0x77   :  { %703 = vmatpush.msra.mxu0 %v73_v19  ;;  %778 = vmatpush.msrb.mxu1 %v130_v40  ;;  %v194_v19 = vld [vmem:[#allocation5 + $0x430] sm:$0xff]  ;;  %v1465_v40 = vld [vmem:[#allocation5 + $0x178] sm:$0xff] }
  0x78   :  { %544 = vmatmul.f32.gmra.mxu0 %v1282_v1  ;;  %1045 = vmatmul.msk.f32.gmra.mxu2 %vm254_vm0, %v1260_v27 }
  0x79   :  { %1040 = vmatmul.msk.f32.gmra.mxu3 %vm254_vm0, %v1284_v3  ;;  %704 = vmatpush.msra.mxu0 %v65_v23  ;;  %v195_v23 = vld [vmem:[#allocation5 + $0x438] sm:$0xff] }
  0x7a   :  { %779 = vmatpush.msrb.mxu1 %v122_v47  ;;  %909 = vmatpush.msrb.mxu2 %v195_v23 }
  0x7b   :  { %853 = vmatpush.msrb.mxu0 %v1380_v30 }
  0x7c   :  { %780 = vmatpush.msrb.mxu1 %v114_v51 }
  0x7d   :  { %854 = vmatpush.msrb.mxu0 %v1382_v33 }
  0x7e   :  { %471 = vmatmul.f32.gmra.mxu1 %v1312_v28 }
  0x7f   :  { %855 = vmatpush.msrb.mxu0 %v1394_v39  ;;  %781 = vmatpush.msrb.mxu1 %v106_v63  ;;  %v91_v63 = vld [vmem:[#allocation5 + $0xf8] sm:$0xff] }
  0x80   :  { %547 = vmatmul.f32.gmra.mxu0 %v1292_v10  ;;  %1046 = vmatmul.msk.f32.gmra.mxu2 %vm254_vm0, %v1266_v41 }
  0x81   :  { %1041 = vmatmul.msk.f32.gmra.mxu3 %vm254_vm0, %v1294_v13  ;;  %856 = vmatpush.msrb.mxu0 %v1397_v42 }
  0x82   :  { %782 = vmatpush.msrb.mxu1 %v98_v2 }
  0x83   :  { %857 = vmatpush.msrb.mxu0 %v1410_v48 }
  0x84   :  { %783 = vmatpush.msrb.mxu1 %v90_v16 }
  0x85   :  { %858 = vmatpush.msrb.mxu0 %v1416_v53 }
  0x86   :  { %474 = vmatmul.f32.gmra.mxu1 %v1322_v36 }
  0x87   :  { %859 = vmatpush.msrb.mxu0 %v1431_v0  ;;  %784 = vmatpush.msrb.mxu1 %v82_v18 }
  0x88   :  { %550 = vmatmul.f32.gmra.mxu0 %v1302_v20  ;;  %1047 = vmatmul.msk.f32.gmra.mxu2 %vm254_vm0, %v1274_v55 }
  0x89   :  { %1042 = vmatmul.msk.f32.gmra.mxu3 %vm254_vm0, %v1304_v21  ;;  %860 = vmatpush.msrb.mxu0 %v1434_v4 }
  0x8a   :  { %785 = vmatpush.msrb.mxu1 %v74_v38 }
  0x8b   :  { %861 = vmatpush.msrb.mxu0 %v1448_v17 }
  0x8d   :  { %862 = vmatpush.msrb.mxu0 %v1451_v22 }
  0x8e   :  { %477 = vmatmul.f32.gmra.mxu1 %v1330_v45 }
  0x8f   :  { %863 = vmatpush.msrb.mxu0 %v1465_v40 }
  0x90   :  { %553 = vmatmul.f32.gmra.mxu0 %v1312_v28  ;;  %1048 = vmatmul.msk.f32.gmra.mxu2 %vm254_vm0, %v1284_v3 }
  0x91   :  { %1043 = vmatmul.msk.f32.gmra.mxu3 %vm254_vm0, %v1314_v29 }
  0x96   :  { %480 = vmatmul.f32.gmra.mxu1 %v1337_v50 }
  0x98   :  { %556 = vmatmul.f32.gmra.mxu0 %v1322_v36  ;;  %1049 = vmatmul.msk.f32.gmra.mxu2 %vm254_vm0, %v1294_v13 }
  0x99   :  { %1051 = vmatmul.msk.f32.vlgmr.msra.gmra.mxu3 %vm254_vm0, %v1314_v29 }
  0x9a   :  { %824 = vmatpush.msra.mxu3 %v218_v25  ;;  %v337_v37 = vpop.f32.mrf.mxu1 }
  0x9b   :  { %v1385_v35 = vpop.f32.mrf.mxu3 }
  0x9c   :  { %825 = vmatpush.msra.mxu3 %v210_v32 }
  0x9e   :  { %623 = vmatmul.f32.vlgmr.msra.gmra.mxu1 %v1272_v54  ;;  %826 = vmatpush.msra.mxu3 %v202_v52 }
  0xa0   :  { %559 = vmatmul.f32.gmra.mxu0 %v1330_v45  ;;  %1050 = vmatmul.msk.f32.gmra.mxu2 %vm254_vm0, %v1304_v21 }
  0xa1   :  { %1052 = vmatmul.msk.f32.vlgmr.msrb.gmra.mxu3 %vm254_vm0, %v1256_v12 }
  0xa2   :  { %827 = vmatpush.msra.mxu3 %v194_v19 }
  0xa3   :  { %v1399_v43 = vpop.f32.mrf.mxu3  ;;  %v340_v44 = vpop.f32.mrf.mxu1 }
  0xa6   :  { %626 = vmatmul.f32.gmra.mxu1 %v1282_v1 }
  0xa8   :  { %562 = vmatmul.f32.gmra.mxu0 %v1337_v50  ;;  %1060 = vmatmul.msk.f32.vlgmr.msra.gmra.mxu2 %vm254_vm0, %v1256_v12 }
  0xa9   :  { %1053 = vmatmul.msk.f32.gmra.mxu3 %vm254_vm0, %v1260_v27 }
  0xab   :  { %v1418_v57 = vpop.f32.mrf.mxu3  ;;  %v343_v58 = vpop.f32.mrf.mxu1 }
  0xac   :  { %v296_v59 = vpop.f32.mrf.mxu0 }
  0xad   :  { %v297_v60 = vadd.f32 %v296_v59, %v1413_v49 }
  0xae   :  { %629 = vmatmul.f32.gmra.mxu1 %v1292_v10 }
  0xaf   :  { %v338_v61 = vadd.f32 %v337_v37, %v297_v60 }
  0xb0   :  { %705 = vmatmul.f32.vlgmr.msra.gmra.mxu0 %v1272_v54  ;;  %1061 = vmatmul.msk.f32.gmra.mxu2 %vm254_vm0, %v1260_v27 }
  0xb1   :  { %1054 = vmatmul.msk.f32.gmra.mxu3 %vm254_vm0, %v1266_v41  ;;  %935 = vst [vmem:[#allocation8] sm:$0xff] %v338_v61 }
  0xb3   :  { %v378_v5 = vpop.f32.mrf.mxu2  ;;  %v1436_v6 = vpop.f32.mrf.mxu3 }
  0xb4   :  { %v379_v7 = vadd.f32 %v378_v5, %v1429_v62  ;;  %v299_v8 = vpop.f32.mrf.mxu0  ;;  %v346_v9 = vpop.f32.mrf.mxu1 }
  0xb5   :  { %v300_v11 = vadd.f32 %v299_v8, %v1413_v49  ;;  %v75_v8 = vld [vmem:[#allocation5 + $0x78] sm:$0xff] }
  0xb6   :  { %v420_v14 = vadd.f32 %v1385_v35, %v379_v7  ;;  %632 = vmatmul.f32.gmra.mxu1 %v1302_v20 }
  0xb7   :  { %v341_v15 = vadd.f32 %v340_v44, %v300_v11  ;;  %v1468_v44 = vld [vmem:[#allocation5 + $0x138] sm:$0xff] }
  0xb8   :  { %708 = vmatmul.f32.gmra.mxu0 %v1282_v1  ;;  %936 = vst [vmem:[#allocation8 + $0x8] sm:$0xff] %v420_v14  ;;  %1062 = vmatmul.msk.f32.gmra.mxu2 %vm254_vm0, %v1266_v41 }
  0xb9   :  { %1055 = vmatmul.msk.f32.gmra.mxu3 %vm254_vm0, %v1274_v55  ;;  %939 = vst [vmem:[#allocation8 + $0x20] sm:$0xff] %v341_v15  ;;  %864 = vmatpush.msrb.mxu0 %v1468_v44 }
  0xbb   :  { %v381_v24 = vpop.f32.mrf.mxu2  ;;  %v1453_v25 = vpop.f32.mrf.mxu3  ;;  %865 = vmatpush.msrb.mxu0 %v91_v63 }
  0xbc   :  { %v382_v26 = vadd.f32 %v381_v24, %v1429_v62  ;;  %v302_v31 = vpop.f32.mrf.mxu0  ;;  %v349_v32 = vpop.f32.mrf.mxu1 }
  0xbd   :  { %v303_v34 = vadd.f32 %v302_v31, %v1413_v49 }
  0xbe   :  { %v423_v35 = vadd.f32 %v1399_v43, %v382_v26  ;;  %635 = vmatmul.f32.gmra.mxu1 %v1312_v28  ;;  %v66_v43 = vld [vmem:[#allocation5 + $0x30] sm:$0xff] }
  0xbf   :  { %v344_v37 = vadd.f32 %v343_v58, %v303_v34  ;;  %786 = vmatpush.msrb.mxu1 %v66_v43 }
  0xc0   :  { %711 = vmatmul.f32.gmra.mxu0 %v1292_v10  ;;  %940 = vst [vmem:[#allocation8 + $0x28] sm:$0xff] %v423_v35  ;;  %1063 = vmatmul.msk.f32.gmra.mxu2 %vm254_vm0, %v1274_v55 }
  0xc1   :  { %1056 = vmatmul.msk.f32.gmra.mxu3 %vm254_vm0, %v1284_v3  ;;  %943 = vst [vmem:[#allocation8 + $0x40] sm:$0xff] %v344_v37  ;;  %1088 = vmatpush.msra.mxu1 %v1380_v30  ;;  %v83_v30 = vld [vmem:[#allocation5 + $0xb8] sm:$0xff] }
  0xc2   :  { %866 = vmatpush.msrb.mxu0 %v83_v30 }
  0xc3   :  { %v384_v47 = vpop.f32.mrf.mxu2  ;;  %v1470_v51 = vpop.f32.mrf.mxu3  ;;  %1089 = vmatpush.msra.mxu1 %v1382_v33 }
  0xc4   :  { %v385_v52 = vadd.f32 %v384_v47, %v1429_v62  ;;  %v305_v56 = vpop.f32.mrf.mxu0  ;;  %v352_v58 = vpop.f32.mrf.mxu1  ;;  %867 = vmatpush.msrb.mxu0 %v75_v8 }
  0xc5   :  { %v306_v59 = vadd.f32 %v305_v56, %v1413_v49  ;;  %1090 = vmatpush.msra.mxu1 %v1394_v39  ;;  %v67_v39 = vld [vmem:[#allocation5 + $0x38] sm:$0xff]  ;;  %v1114_v56 = vld [vmem:[#allocation2 + $0x8] sm:$0xff] }
  0xc6   :  { %v426_v60 = vadd.f32 %v1418_v57, %v385_v52  ;;  %638 = vmatmul.f32.gmra.mxu1 %v1322_v36  ;;  %868 = vmatpush.msrb.mxu0 %v67_v39 }
  0xc7   :  { %v347_v61 = vadd.f32 %v346_v9, %v306_v59  ;;  %1091 = vmatpush.msra.mxu1 %v1397_v42 }
  0xc8   :  { %714 = vmatmul.f32.gmra.mxu0 %v1302_v20  ;;  %944 = vst [vmem:[#allocation8 + $0x48] sm:$0xff] %v426_v60  ;;  %1064 = vmatmul.msk.f32.gmra.mxu2 %vm254_vm0, %v1284_v3  ;;  %v1540_v60 = vperm.slane %v1403_v46, 3 }
  0xc9   :  { %1057 = vmatmul.msk.f32.gmra.mxu3 %vm254_vm0, %v1294_v13  ;;  %947 = vst [vmem:[#allocation8 + $0x60] sm:$0xff] %v347_v61  ;;  %1092 = vmatpush.msra.mxu1 %v1410_v48 }
  0xcb   :  { %v387_v57 = vpop.f32.mrf.mxu2  ;;  %v1485_v2 = vpop.f32.mrf.mxu3  ;;  %1093 = vmatpush.msra.mxu1 %v1416_v53 }
  0xcc   :  { %v388_v33 = vadd.f32 %v387_v57, %v1429_v62  ;;  %v308_v5 = vpop.f32.mrf.mxu0  ;;  %v355_v7 = vpop.f32.mrf.mxu1 }
  0xcd   :  { %v309_v9 = vadd.f32 %v308_v5, %v1413_v49  ;;  %1094 = vmatpush.msra.mxu1 %v1431_v0  ;;  %v1515_v0 = vperm.slane %v1403_v46, 2 }
  0xce   :  { %v429_v11 = vadd.f32 %v1436_v6, %v388_v33  ;;  %641 = vmatmul.f32.gmra.mxu1 %v1330_v45 }
  0xcf   :  { %v350_v14 = vadd.f32 %v349_v32, %v309_v9  ;;  %1095 = vmatpush.msra.mxu1 %v1434_v4 }
  0xd0   :  { %717 = vmatmul.f32.gmra.mxu0 %v1312_v28  ;;  %948 = vst [vmem:[#allocation8 + $0x68] sm:$0xff] %v429_v11  ;;  %1065 = vmatmul.msk.f32.gmra.mxu2 %vm254_vm0, %v1294_v13 }
  0xd1   :  { %1058 = vmatmul.msk.f32.gmra.mxu3 %vm254_vm0, %v1304_v21  ;;  %951 = vst [vmem:[#allocation8 + $0x80] sm:$0xff] %v350_v14  ;;  %1096 = vmatpush.msra.mxu1 %v1448_v17 }
  0xd3   :  { %v390_v42 = vpop.f32.mrf.mxu2  ;;  %v1500_v48 = vpop.f32.mrf.mxu3  ;;  %1097 = vmatpush.msra.mxu1 %v1451_v22 }
  0xd4   :  { %v391_v6 = vadd.f32 %v390_v42, %v1429_v62  ;;  %v311_v15 = vpop.f32.mrf.mxu0  ;;  %v358_v53 = vpop.f32.mrf.mxu1 }
  0xd5   :  { %v312_v16 = vadd.f32 %v311_v15, %v1413_v49  ;;  %1098 = vmatpush.msra.mxu1 %v1465_v40 }
  0xd6   :  { %v432_v18 = vadd.f32 %v1453_v25, %v391_v6  ;;  %644 = vmatmul.f32.gmra.mxu1 %v1337_v50 }
  0xd7   :  { %v353_v19 = vadd.f32 %v352_v58, %v312_v16  ;;  %1099 = vmatpush.msra.mxu1 %v1468_v44 }
  0xd8   :  { %720 = vmatmul.f32.gmra.mxu0 %v1322_v36  ;;  %952 = vst [vmem:[#allocation8 + $0x88] sm:$0xff] %v432_v18  ;;  %1066 = vmatmul.msk.f32.gmra.mxu2 %vm254_vm0, %v1304_v21 }
  0xd9   :  { %1059 = vmatmul.msk.f32.gmra.mxu3 %vm254_vm0, %v1314_v29  ;;  %955 = vst [vmem:[#allocation8 + $0xa0] sm:$0xff] %v353_v19  ;;  %1100 = vmatpush.msra.mxu1 %v91_v63 }
  0xdb   :  { %v393_v4 = vpop.f32.mrf.mxu2  ;;  %v501_v17 = vpop.f32.mrf.mxu3  ;;  %1101 = vmatpush.msra.mxu1 %v83_v30 }
  0xdc   :  { %v394_v23 = vadd.f32 %v393_v4, %v1429_v62  ;;  %v460_v24 = vpop.f32.mrf.mxu1 }
  0xdd   :  { %v314_v22 = vpop.f32.mrf.mxu0  ;;  %v461_v26 = vadd.f32 %v460_v24, %v1515_v0  ;;  %1102 = vmatpush.msra.mxu1 %v75_v8 }
  0xde   :  { %v315_v25 = vadd.f32 %v314_v22, %v1413_v49  ;;  %v435_v31 = vadd.f32 %v1470_v51, %v394_v23  ;;  %787 = vmatmul.f32.vlgmr.msrb.gmra.mxu1 %v1272_v54 }
  0xdf   :  { %v502_v34 = vadd.f32 %v501_v17, %v461_v26  ;;  %1103 = vmatpush.msra.mxu1 %v67_v39 }
  0xe0   :  { %v356_v32 = vadd.f32 %v355_v7, %v315_v25  ;;  %723 = vmatmul.f32.gmra.mxu0 %v1330_v45  ;;  %956 = vst [vmem:[#allocation8 + $0xa8] sm:$0xff] %v435_v31  ;;  %1067 = vmatmul.msk.f32.gmra.mxu2 %vm254_vm0, %v1314_v29 }
  0xe1   :  { %1068 = vmatmul.msk.f32.vlgmr.msra.gmra.mxu3 %vm254_vm0, %v1256_v12  ;;  %937 = vst [vmem:[#allocation8 + $0x10] sm:$0xff] %v502_v34 }
  0xe2   :  { %959 = vst [vmem:[#allocation8 + $0xc0] sm:$0xff] %v356_v32 }
  0xe3   :  { %v396_v35 = vpop.f32.mrf.mxu2 }
  0xe4   :  { %v504_v37 = vpop.f32.mrf.mxu3  ;;  %v397_v38 = vadd.f32 %v396_v35, %v1429_v62  ;;  %v463_v43 = vpop.f32.mrf.mxu1 }
  0xe5   :  { %v317_v40 = vpop.f32.mrf.mxu0  ;;  %v464_v47 = vadd.f32 %v463_v43, %v1515_v0 }
  0xe6   :  { %v318_v44 = vadd.f32 %v317_v40, %v1413_v49  ;;  %v438_v51 = vadd.f32 %v1485_v2, %v397_v38  ;;  %790 = vmatmul.f32.gmra.mxu1 %v1282_v1 }
  0xe7   :  { %v505_v12 = vadd.f32 %v504_v37, %v464_v47 }
  0xe8   :  { %v359_v52 = vadd.f32 %v358_v53, %v318_v44  ;;  %726 = vmatmul.f32.gmra.mxu0 %v1337_v50  ;;  %960 = vst [vmem:[#allocation8 + $0xc8] sm:$0xff] %v438_v51  ;;  %1076 = vmatmul.msk.f32.vlgmr.msrb.gmra.mxu2 %vm254_vm0, %v1114_v56 }
  0xe9   :  { %1069 = vmatmul.msk.f32.gmra.mxu3 %vm254_vm0, %v1260_v27  ;;  %941 = vst [vmem:[#allocation8 + $0x30] sm:$0xff] %v505_v12 }
  0xea   :  { %963 = vst [vmem:[#allocation8 + $0xe0] sm:$0xff] %v359_v52 }
  0xeb   :  { %v399_v49 = vpop.f32.mrf.mxu2 }
  0xec   :  { %v507_v58 = vpop.f32.mrf.mxu3  ;;  %v400_v59 = vadd.f32 %v399_v49, %v1429_v62  ;;  %v466_v63 = vpop.f32.mrf.mxu1 }
  0xed   :  { %v542_v61 = vpop.f32.mrf.mxu0  ;;  %v467_v30 = vadd.f32 %v466_v63, %v1515_v0 }
  0xee   :  { %v441_v57 = vadd.f32 %v1500_v48, %v400_v59  ;;  %793 = vmatmul.f32.gmra.mxu1 %v1292_v10  ;;  %v543_v33 = vadd.f32 %v542_v61, %v1540_v60 }
  0xef   :  { %v508_v2 = vadd.f32 %v507_v58, %v467_v30  ;;  %v1603_v30 = vperm.slane %v1403_v46, 5 }
  0xf0   :  { %869 = vmatmul.f32.vlgmr.msrb.gmra.mxu0 %v1272_v54  ;;  %964 = vst [vmem:[#allocation8 + $0xe8] sm:$0xff] %v441_v57  ;;  %1077 = vmatmul.msk.f32.gmra.mxu2 %vm254_vm0, %v1260_v27 }
  0xf1   :  { %1070 = vmatmul.msk.f32.gmra.mxu3 %vm254_vm0, %v1266_v41  ;;  %945 = vst [vmem:[#allocation8 + $0x50] sm:$0xff] %v508_v2 }
  0xf3   :  { %v583_v5 = vpop.f32.mrf.mxu2 }
  0xf4   :  { %v510_v62 = vpop.f32.mrf.mxu3  ;;  %v584_v7 = vadd.f32 %v583_v5, %v543_v33  ;;  %v469_v9 = vpop.f32.mrf.mxu1 }
  0xf5   :  { %v545_v8 = vpop.f32.mrf.mxu0  ;;  %v470_v11 = vadd.f32 %v469_v9, %v1515_v0 }
  0xf6   :  { %938 = vst [vmem:[#allocation8 + $0x18] sm:$0xff] %v584_v7  ;;  %796 = vmatmul.f32.gmra.mxu1 %v1302_v20  ;;  %v546_v39 = vadd.f32 %v545_v8, %v1540_v60 }
  0xf7   :  { %v511_v54 = vadd.f32 %v510_v62, %v470_v11 }
  0xf8   :  { %872 = vmatmul.f32.gmra.mxu0 %v1282_v1  ;;  %1078 = vmatmul.msk.f32.gmra.mxu2 %vm254_vm0, %v1266_v41 }
  0xf9   :  { %1071 = vmatmul.msk.f32.gmra.mxu3 %vm254_vm0, %v1274_v55  ;;  %949 = vst [vmem:[#allocation8 + $0x70] sm:$0xff] %v511_v54 }
  0xfb   :  { %v586_v14 = vpop.f32.mrf.mxu2 }
  0xfc   :  { %v513_v27 = vpop.f32.mrf.mxu3  ;;  %v587_v42 = vadd.f32 %v586_v14, %v546_v39  ;;  %v472_v6 = vpop.f32.mrf.mxu1 }
  0xfd   :  { %v548_v48 = vpop.f32.mrf.mxu0  ;;  %v473_v15 = vadd.f32 %v472_v6, %v1515_v0 }
  0xfe   :  { %942 = vst [vmem:[#allocation8 + $0x38] sm:$0xff] %v587_v42  ;;  %799 = vmatmul.f32.gmra.mxu1 %v1312_v28  ;;  %v549_v53 = vadd.f32 %v548_v48, %v1540_v60 }
  0xff   :  { %v514_v1 = vadd.f32 %v513_v27, %v473_v15 }
 0x100   :  { %875 = vmatmul.f32.gmra.mxu0 %v1292_v10  ;;  %1079 = vmatmul.msk.f32.gmra.mxu2 %vm254_vm0, %v1274_v55 }
 0x101   :  { %1072 = vmatmul.msk.f32.gmra.mxu3 %vm254_vm0, %v1284_v3  ;;  %953 = vst [vmem:[#allocation8 + $0x90] sm:$0xff] %v514_v1 }
 0x103   :  { %v589_v16 = vpop.f32.mrf.mxu2 }
 0x104   :  { %v516_v41 = vpop.f32.mrf.mxu3  ;;  %v590_v18 = vadd.f32 %v589_v16, %v549_v53  ;;  %v475_v4 = vpop.f32.mrf.mxu1 }
 0x105   :  { %v551_v19 = vpop.f32.mrf.mxu0  ;;  %v476_v17 = vadd.f32 %v475_v4, %v1515_v0 }
 0x106   :  { %946 = vst [vmem:[#allocation8 + $0x58] sm:$0xff] %v590_v18  ;;  %802 = vmatmul.f32.gmra.mxu1 %v1322_v36  ;;  %v552_v23 = vadd.f32 %v551_v19, %v1540_v60 }
 0x107   :  { %v517_v10 = vadd.f32 %v516_v41, %v476_v17 }
 0x108   :  { %878 = vmatmul.f32.gmra.mxu0 %v1302_v20  ;;  %1080 = vmatmul.msk.f32.gmra.mxu2 %vm254_vm0, %v1284_v3 }
 0x109   :  { %1073 = vmatmul.msk.f32.gmra.mxu3 %vm254_vm0, %v1294_v13  ;;  %957 = vst [vmem:[#allocation8 + $0xb0] sm:$0xff] %v517_v10 }
 0x10b   :  { %v592_v22 = vpop.f32.mrf.mxu2 }
 0x10c   :  { %v519_v55 = vpop.f32.mrf.mxu3  ;;  %v593_v24 = vadd.f32 %v592_v22, %v552_v23  ;;  %v478_v26 = vpop.f32.mrf.mxu1 }
 0x10d   :  { %v554_v25 = vpop.f32.mrf.mxu0  ;;  %v479_v31 = vadd.f32 %v478_v26, %v1515_v0 }
 0x10e   :  { %950 = vst [vmem:[#allocation8 + $0x78] sm:$0xff] %v593_v24  ;;  %805 = vmatmul.f32.gmra.mxu1 %v1330_v45  ;;  %v555_v32 = vadd.f32 %v554_v25, %v1540_v60 }
 0x10f   :  { %v520_v20 = vadd.f32 %v519_v55, %v479_v31 }
 0x110   :  { %881 = vmatmul.f32.gmra.mxu0 %v1312_v28  ;;  %1081 = vmatmul.msk.f32.gmra.mxu2 %vm254_vm0, %v1294_v13 }
 0x111   :  { %1074 = vmatmul.msk.f32.gmra.mxu3 %vm254_vm0, %v1304_v21  ;;  %961 = vst [vmem:[#allocation8 + $0xd0] sm:$0xff] %v520_v20 }
 0x113   :  { %v595_v34 = vpop.f32.mrf.mxu2 }
 0x114   :  { %v522_v3 = vpop.f32.mrf.mxu3  ;;  %v596_v35 = vadd.f32 %v595_v34, %v555_v32  ;;  %v481_v38 = vpop.f32.mrf.mxu1 }
 0x115   :  { %v557_v37 = vpop.f32.mrf.mxu0  ;;  %v482_v40 = vadd.f32 %v481_v38, %v1515_v0  ;;  %v1592_v0 = vperm.slane %v1403_v46, 4 }
 0x116   :  { %954 = vst [vmem:[#allocation8 + $0x98] sm:$0xff] %v596_v35  ;;  %808 = vmatmul.f32.gmra.mxu1 %v1337_v50  ;;  %v558_v43 = vadd.f32 %v557_v37, %v1540_v60 }
 0x117   :  { %v523_v28 = vadd.f32 %v522_v3, %v482_v40 }
 0x118   :  { %884 = vmatmul.f32.gmra.mxu0 %v1322_v36  ;;  %1082 = vmatmul.msk.f32.gmra.mxu2 %vm254_vm0, %v1304_v21 }
 0x119   :  { %1075 = vmatmul.msk.f32.gmra.mxu3 %vm254_vm0, %v1314_v29  ;;  %965 = vst [vmem:[#allocation8 + $0xf0] sm:$0xff] %v523_v28 }
 0x11b   :  { %v598_v13 = vpop.f32.mrf.mxu2 }
 0x11c   :  { %v604_v44 = vpop.f32.mrf.mxu3  ;;  %v599_v47 = vadd.f32 %v598_v13, %v558_v43  ;;  %v624_v52 = vpop.f32.mrf.mxu1 }
 0x11d   :  { %v560_v51 = vpop.f32.mrf.mxu0  ;;  %v625_v21 = vadd.f32 %v624_v52, %v1592_v0 }
 0x11e   :  { %958 = vst [vmem:[#allocation8 + $0xb8] sm:$0xff] %v599_v47  ;;  %890 = vmatmul.f32.vlgmr.msra.gmra.mxu1 %v1337_v50  ;;  %v561_v36 = vadd.f32 %v560_v51, %v1540_v60 }
 0x120   :  { %887 = vmatmul.f32.gmra.mxu0 %v1330_v45  ;;  %1083 = vmatmul.msk.f32.gmra.mxu2 %vm254_vm0, %v1314_v29 }
 0x123   :  { %v601_v12 = vpop.f32.mrf.mxu2 }
 0x124   :  { %v665_v56 = vpop.f32.mrf.mxu3  ;;  %v602_v49 = vadd.f32 %v601_v12, %v561_v36  ;;  %v627_v61 = vpop.f32.mrf.mxu1  ;;  %v1618_v12 = vperm.slane %v1403_v46, 6 }
 0x125   :  { %v666_v58 = vadd.f32 %v665_v56, %v625_v21  ;;  %v563_v59 = vpop.f32.mrf.mxu0  ;;  %v628_v45 = vadd.f32 %v627_v61, %v1592_v0 }
 0x126   :  { %v564_v63 = vadd.f32 %v563_v59, %v1540_v60  ;;  %962 = vst [vmem:[#allocation8 + $0xd8] sm:$0xff] %v602_v49 }
 0x127   :  { %968 = vst [vmem:[#allocation8 + $0x100] sm:$0xff] %v666_v58 }
 0x128   :  { %v605_v50 = vadd.f32 %v604_v44, %v564_v63 }
 0x12a   :  { %966 = vst [vmem:[#allocation8 + $0xf8] sm:$0xff] %v605_v50 }
 0x12b   :  { %v747_v57 = vpop.f32.mrf.mxu2 }
 0x12c   :  { %v668_v29 = vpop.f32.mrf.mxu3  ;;  %v630_v62 = vpop.f32.mrf.mxu1 }
 0x12d   :  { %v669_v2 = vadd.f32 %v668_v29, %v628_v45  ;;  %v706_v33 = vpop.f32.mrf.mxu0  ;;  %v631_v60 = vadd.f32 %v630_v62, %v1592_v0 }
 0x12e   :  { %v707_v5 = vadd.f32 %v706_v33, %v1603_v30  ;;  %v1625_v33 = vperm.slane %v1403_v46, 7 }
 0x12f   :  { %972 = vst [vmem:[#allocation8 + $0x120] sm:$0xff] %v669_v2 }
 0x130   :  { %v748_v7 = vadd.f32 %v747_v57, %v707_v5 }
 0x132   :  { %969 = vst [vmem:[#allocation8 + $0x108] sm:$0xff] %v748_v7 }
 0x133   :  { %v750_v9 = vpop.f32.mrf.mxu2 }
 0x134   :  { %v671_v8 = vpop.f32.mrf.mxu3  ;;  %v633_v39 = vpop.f32.mrf.mxu1 }
 0x135   :  { %v672_v11 = vadd.f32 %v671_v8, %v631_v60  ;;  %v709_v54 = vpop.f32.mrf.mxu0  ;;  %v634_v42 = vadd.f32 %v633_v39, %v1592_v0 }
 0x136   :  { %v710_v27 = vadd.f32 %v709_v54, %v1603_v30 }
 0x137   :  { %976 = vst [vmem:[#allocation8 + $0x140] sm:$0xff] %v672_v11 }
 0x138   :  { %v751_v14 = vadd.f32 %v750_v9, %v710_v27 }
 0x13a   :  { %973 = vst [vmem:[#allocation8 + $0x128] sm:$0xff] %v751_v14 }
 0x13b   :  { %v753_v6 = vpop.f32.mrf.mxu2 }
 0x13c   :  { %v674_v48 = vpop.f32.mrf.mxu3  ;;  %v636_v53 = vpop.f32.mrf.mxu1 }
 0x13d   :  { %v675_v15 = vadd.f32 %v674_v48, %v634_v42  ;;  %v712_v1 = vpop.f32.mrf.mxu0  ;;  %v637_v18 = vadd.f32 %v636_v53, %v1592_v0 }
 0x13e   :  { %v713_v41 = vadd.f32 %v712_v1, %v1603_v30 }
 0x13f   :  { %980 = vst [vmem:[#allocation8 + $0x160] sm:$0xff] %v675_v15 }
 0x140   :  { %v754_v16 = vadd.f32 %v753_v6, %v713_v41 }
 0x142   :  { %977 = vst [vmem:[#allocation8 + $0x148] sm:$0xff] %v754_v16 }
 0x143   :  { %v756_v4 = vpop.f32.mrf.mxu2 }
 0x144   :  { %v677_v19 = vpop.f32.mrf.mxu3  ;;  %v639_v23 = vpop.f32.mrf.mxu1 }
 0x145   :  { %v678_v17 = vadd.f32 %v677_v19, %v637_v18  ;;  %v715_v10 = vpop.f32.mrf.mxu0  ;;  %v640_v24 = vadd.f32 %v639_v23, %v1592_v0 }
 0x146   :  { %v716_v55 = vadd.f32 %v715_v10, %v1603_v30 }
 0x147   :  { %984 = vst [vmem:[#allocation8 + $0x180] sm:$0xff] %v678_v17 }
 0x148   :  { %v757_v22 = vadd.f32 %v756_v4, %v716_v55 }
 0x14a   :  { %981 = vst [vmem:[#allocation8 + $0x168] sm:$0xff] %v757_v22 }
 0x14b   :  { %v759_v26 = vpop.f32.mrf.mxu2 }
 0x14c   :  { %v680_v25 = vpop.f32.mrf.mxu3  ;;  %v642_v32 = vpop.f32.mrf.mxu1 }
 0x14d   :  { %v681_v31 = vadd.f32 %v680_v25, %v640_v24  ;;  %v718_v20 = vpop.f32.mrf.mxu0  ;;  %v643_v35 = vadd.f32 %v642_v32, %v1592_v0 }
 0x14e   :  { %v719_v3 = vadd.f32 %v718_v20, %v1603_v30 }
 0x14f   :  { %988 = vst [vmem:[#allocation8 + $0x1a0] sm:$0xff] %v681_v31 }
 0x150   :  { %v760_v34 = vadd.f32 %v759_v26, %v719_v3 }
 0x152   :  { %985 = vst [vmem:[#allocation8 + $0x188] sm:$0xff] %v760_v34 }
 0x153   :  { %v762_v38 = vpop.f32.mrf.mxu2 }
 0x154   :  { %v683_v37 = vpop.f32.mrf.mxu3  ;;  %v645_v43 = vpop.f32.mrf.mxu1 }
 0x155   :  { %v684_v40 = vadd.f32 %v683_v37, %v643_v35  ;;  %v721_v28 = vpop.f32.mrf.mxu0  ;;  %v646_v47 = vadd.f32 %v645_v43, %v1592_v0 }
 0x156   :  { %v722_v13 = vadd.f32 %v721_v28, %v1603_v30 }
 0x157   :  { %992 = vst [vmem:[#allocation8 + $0x1c0] sm:$0xff] %v684_v40 }
 0x158   :  { %v763_v44 = vadd.f32 %v762_v38, %v722_v13 }
 0x15a   :  { %989 = vst [vmem:[#allocation8 + $0x1a8] sm:$0xff] %v763_v44 }
 0x15b   :  { %v765_v52 = vpop.f32.mrf.mxu2 }
 0x15c   :  { %v686_v51 = vpop.f32.mrf.mxu3  ;;  %v788_v56 = vpop.f32.mrf.mxu1 }
 0x15d   :  { %v687_v36 = vadd.f32 %v686_v51, %v646_v47  ;;  %v724_v21 = vpop.f32.mrf.mxu0  ;;  %v789_v59 = vadd.f32 %v788_v56, %v1618_v12 }
 0x15e   :  { %v725_v49 = vadd.f32 %v724_v21, %v1603_v30 }
 0x15f   :  { %996 = vst [vmem:[#allocation8 + $0x1e0] sm:$0xff] %v687_v36 }
 0x160   :  { %v766_v58 = vadd.f32 %v765_v52, %v725_v49 }
 0x162   :  { %993 = vst [vmem:[#allocation8 + $0x1c8] sm:$0xff] %v766_v58 }
 0x163   :  { %v768_v61 = vpop.f32.mrf.mxu2 }
 0x164   :  { %v829_v63 = vpop.f32.mrf.mxu3  ;;  %v791_v45 = vpop.f32.mrf.mxu1 }
 0x165   :  { %v830_v50 = vadd.f32 %v829_v63, %v789_v59  ;;  %v727_v0 = vpop.f32.mrf.mxu0  ;;  %v792_v2 = vadd.f32 %v791_v45, %v1618_v12 }
 0x166   :  { %v728_v29 = vadd.f32 %v727_v0, %v1603_v30 }
 0x167   :  { %970 = vst [vmem:[#allocation8 + $0x110] sm:$0xff] %v830_v50 }
 0x168   :  { %v769_v57 = vadd.f32 %v768_v61, %v728_v29 }
 0x16a   :  { %997 = vst [vmem:[#allocation8 + $0x1e8] sm:$0xff] %v769_v57 }
 0x16b   :  { %v911_v5 = vpop.f32.mrf.mxu2 }
 0x16c   :  { %v832_v62 = vpop.f32.mrf.mxu3  ;;  %v794_v8 = vpop.f32.mrf.mxu1 }
 0x16d   :  { %v833_v7 = vadd.f32 %v832_v62, %v792_v2  ;;  %v870_v60 = vpop.f32.mrf.mxu0  ;;  %v795_v54 = vadd.f32 %v794_v8, %v1618_v12 }
 0x16e   :  { %v871_v9 = vadd.f32 %v870_v60, %v1625_v33 }
 0x16f   :  { %974 = vst [vmem:[#allocation8 + $0x130] sm:$0xff] %v833_v7 }
 0x170   :  { %v912_v11 = vadd.f32 %v911_v5, %v871_v9 }
 0x172   :  { %971 = vst [vmem:[#allocation8 + $0x118] sm:$0xff] %v912_v11 }
 0x173   :  { %v914_v39 = vpop.f32.mrf.mxu2 }
 0x174   :  { %v835_v30 = vpop.f32.mrf.mxu3  ;;  %v797_v42 = vpop.f32.mrf.mxu1 }
 0x175   :  { %v836_v27 = vadd.f32 %v835_v30, %v795_v54  ;;  %v873_v14 = vpop.f32.mrf.mxu0  ;;  %v798_v6 = vadd.f32 %v797_v42, %v1618_v12 }
 0x176   :  { %v874_v46 = vadd.f32 %v873_v14, %v1625_v33 }
 0x177   :  { %978 = vst [vmem:[#allocation8 + $0x150] sm:$0xff] %v836_v27 }
 0x178   :  { %v915_v48 = vadd.f32 %v914_v39, %v874_v46 }
 0x17a   :  { %975 = vst [vmem:[#allocation8 + $0x138] sm:$0xff] %v915_v48 }
 0x17b   :  { %v917_v1 = vpop.f32.mrf.mxu2 }
 0x17c   :  { %v838_v15 = vpop.f32.mrf.mxu3  ;;  %v800_v16 = vpop.f32.mrf.mxu1 }
 0x17d   :  { %v839_v53 = vadd.f32 %v838_v15, %v798_v6  ;;  %v876_v41 = vpop.f32.mrf.mxu0  ;;  %v801_v4 = vadd.f32 %v800_v16, %v1618_v12 }
 0x17e   :  { %v877_v18 = vadd.f32 %v876_v41, %v1625_v33 }
 0x17f   :  { %982 = vst [vmem:[#allocation8 + $0x170] sm:$0xff] %v839_v53 }
 0x180   :  { %v918_v19 = vadd.f32 %v917_v1, %v877_v18 }
 0x182   :  { %979 = vst [vmem:[#allocation8 + $0x158] sm:$0xff] %v918_v19 }
 0x183   :  { %v920_v10 = vpop.f32.mrf.mxu2 }
 0x184   :  { %v841_v17 = vpop.f32.mrf.mxu3  ;;  %v803_v22 = vpop.f32.mrf.mxu1 }
 0x185   :  { %v842_v23 = vadd.f32 %v841_v17, %v801_v4  ;;  %v879_v55 = vpop.f32.mrf.mxu0  ;;  %v804_v26 = vadd.f32 %v803_v22, %v1618_v12 }
 0x186   :  { %v880_v24 = vadd.f32 %v879_v55, %v1625_v33 }
 0x187   :  { %986 = vst [vmem:[#allocation8 + $0x190] sm:$0xff] %v842_v23 }
 0x188   :  { %v921_v25 = vadd.f32 %v920_v10, %v880_v24 }
 0x18a   :  { %983 = vst [vmem:[#allocation8 + $0x178] sm:$0xff] %v921_v25 }
 0x18b   :  { %v923_v20 = vpop.f32.mrf.mxu2 }
 0x18c   :  { %v844_v31 = vpop.f32.mrf.mxu3  ;;  %v806_v34 = vpop.f32.mrf.mxu1 }
 0x18d   :  { %v845_v32 = vadd.f32 %v844_v31, %v804_v26  ;;  %v882_v3 = vpop.f32.mrf.mxu0  ;;  %v807_v38 = vadd.f32 %v806_v34, %v1618_v12 }
 0x18e   :  { %v883_v35 = vadd.f32 %v882_v3, %v1625_v33 }
 0x18f   :  { %990 = vst [vmem:[#allocation8 + $0x1b0] sm:$0xff] %v845_v32 }
 0x190   :  { %v924_v37 = vadd.f32 %v923_v20, %v883_v35 }
 0x192   :  { %987 = vst [vmem:[#allocation8 + $0x198] sm:$0xff] %v924_v37 }
 0x193   :  { %v926_v28 = vpop.f32.mrf.mxu2 }
 0x194   :  { %v847_v40 = vpop.f32.mrf.mxu3  ;;  %v809_v44 = vpop.f32.mrf.mxu1 }
 0x195   :  { %v848_v43 = vadd.f32 %v847_v40, %v807_v38  ;;  %v885_v13 = vpop.f32.mrf.mxu0  ;;  %v810_v52 = vadd.f32 %v809_v44, %v1618_v12 }
 0x196   :  { %v886_v47 = vadd.f32 %v885_v13, %v1625_v33 }
 0x197   :  { %994 = vst [vmem:[#allocation8 + $0x1d0] sm:$0xff] %v848_v43 }
 0x198   :  { %v927_v51 = vadd.f32 %v926_v28, %v886_v47 }
 0x19a   :  { %991 = vst [vmem:[#allocation8 + $0x1b8] sm:$0xff] %v927_v51 }
 0x19b   :  { %v929_v21 = vpop.f32.mrf.mxu2 }
 0x19c   :  { %v850_v36 = vpop.f32.mrf.mxu3  ;;  %v891_v59 = vpop.f32.mrf.mxu1 }
 0x19d   :  { %v851_v56 = vadd.f32 %v850_v36, %v810_v52  ;;  %v888_v49 = vpop.f32.mrf.mxu0  ;;  %v892_v63 = vadd.f32 %v891_v59, %v1625_v33 }
 0x19e   :  { %v889_v58 = vadd.f32 %v888_v49, %v1625_v33 }
 0x19f   :  { %998 = vst [vmem:[#allocation8 + $0x1f0] sm:$0xff] %v851_v56 }
 0x1a0   :  { %v930_v61 = vadd.f32 %v929_v21, %v889_v58 }
 0x1a2   :  { %995 = vst [vmem:[#allocation8 + $0x1d8] sm:$0xff] %v930_v61 }
 0x1a3   :  { %v932_v12 = vpop.f32.mrf.mxu2 }
 0x1a4   :  { %v933_v50 = vadd.f32 %v932_v12, %v892_v63 }
 0x1a6   :  { %999 = vst [vmem:[#allocation8 + $0x1f8] sm:$0xff] %v933_v50 }
 0x1a7   :  { %1012 = dma.vmem_to_hbm [thread:$0]  %s1005_s2, 8192, %s1007_s5, [#allocation4], %s1225_s6, %s1225_s6, %s1226_s7  }
 0x1a8   :  { %1215 = dma.done.wait [#allocation4], 8192  }
 0x1a9   :  { %1216 = vsyncadd [#allocation4], 4294959104 }
 0x1aa   :  { %1017 = vsyncpa [#allocation3], 1 }
 0x1ab   :  { %1018 = vsyncpa [#allocation6], 1 }
 0x1ac   :  { %1019 = vsyncpa [#allocation4], 1 }

</bundles_post_ra>
